<compile_context>
chip_gen: v7x
topology: tpu7x:2x2x1
jax: 0.10.0
libtpu: 0.0.40
codegen_flags: <defaults>
</compile_context>

<pallas_src>
import jax
import jax.numpy as jnp
import numpy as np
from jax.experimental import pallas as pl
from jax.experimental.pallas import tpu as pltpu


def linear2_kernel(x_ref, w1_ref, b1_ref, w2_ref, b2_ref, o_ref, h_ref):
    """Fused 2-layer linear.  Grid = (M tiles, N tiles); N innermost.

    h = x @ W1 + b1 is computed once per M tile (at the first N step) into the
    VMEM scratch h_ref and reused for every N tile, so the intermediate
    activation never round-trips through HBM and fc1 is never recomputed.
    """
    @pl.when(pl.program_id(1) == 0)
    def _():
        h = jnp.dot(x_ref[...], w1_ref[...], preferred_element_type=jnp.float32)
        h = h + b1_ref[...].astype(jnp.float32)      # (1, H) broadcasts over rows
        h_ref[...] = h.astype(h_ref.dtype)

    y = jnp.dot(h_ref[...], w2_ref[...], preferred_element_type=jnp.float32)
    y = y + b2_ref[...].astype(jnp.float32)          # bias add rides free VPU slots
    o_ref[...] = y.astype(o_ref.dtype)


def linear2_forward(x, w1_t, b1, w2_t, b2, *, block_m=512, block_n=None):
    """Fused Linear2 forward.

    x:    (B, in)        activations (f32 or bf16)
    w1_t: (in, hidden)   fc1 weight, transposed vs. PyTorch
    b1:   (1, hidden)    fc1 bias
    w2_t: (hidden, out)  fc2 weight, transposed vs. PyTorch
    b2:   (1, out)       fc2 bias
    """
    B, in_size = x.shape
    hidden = w1_t.shape[1]
    out_size = w2_t.shape[1]

    tm = min(block_m, B)
    tn = out_size if block_n is None else min(block_n, out_size)
    m_tiles = pl.cdiv(B, tm)
    n_tiles = pl.cdiv(out_size, tn)

    # Constant-index operands (block index never changes) -> single buffer.
    w1_spec = pl.BlockSpec((in_size, hidden), lambda i, j: (0, 0),
                           pipeline_mode=pl.Buffered(1))
    b1_spec = pl.BlockSpec((1, hidden), lambda i, j: (0, 0),
                           pipeline_mode=pl.Buffered(1))
    if n_tiles == 1:
        w2_spec = pl.BlockSpec((hidden, tn), lambda i, j: (0, j),
                               pipeline_mode=pl.Buffered(1))
        b2_spec = pl.BlockSpec((1, tn), lambda i, j: (0, j),
                               pipeline_mode=pl.Buffered(1))
    else:
        # w2/b2 tiles actually revolve along the N axis -> keep double-buffered.
        w2_spec = pl.BlockSpec((hidden, tn), lambda i, j: (0, j))
        b2_spec = pl.BlockSpec((1, tn), lambda i, j: (0, j))

    # Explicit scoped-VMEM budget (default is 16/32 MiB << physical).
    wbytes = w1_t.dtype.itemsize
    xbytes = x.dtype.itemsize
    w2_bufs = 1 if n_tiles == 1 else 2
    resident = (
        (in_size * hidden + hidden) * wbytes          # w1 + b1 (single-buffered)
        + w2_bufs * (hidden * tn + tn) * wbytes       # w2 + b2 tile(s)
        + 2 * tm * in_size * xbytes                   # x tile, double-buffered
        + 2 * tm * tn * xbytes                        # out tile, double-buffered
        + tm * hidden * wbytes                        # h scratch
    )
    vmem_limit = int(1.5 * resident) + (4 << 20)      # 50% + 4 MiB headroom
    vmem_limit = max(vmem_limit, 32 << 20)
    vmem_limit = min(vmem_limit, 64 << 20)            # stay inside v7x physical VMEM

    def nbytes(a):
        return a.size * a.dtype.itemsize

    cost = pl.CostEstimate(
        flops=2 * B * (in_size * hidden + hidden * out_size),
        transcendentals=0,
        bytes_accessed=(nbytes(x) + nbytes(w1_t) + nbytes(b1)
                        + nbytes(w2_t) + nbytes(b2)
                        + B * out_size * x.dtype.itemsize),
    )

    return pl.pallas_call(
        linear2_kernel,
        out_shape=jax.ShapeDtypeStruct((B, out_size), x.dtype),
        grid=(m_tiles, n_tiles),
        in_specs=[
            pl.BlockSpec((tm, in_size), lambda i, j: (i, 0)),  # x: M-tiled only
            w1_spec,
            b1_spec,
            w2_spec,
            b2_spec,
        ],
        out_specs=pl.BlockSpec((tm, tn), lambda i, j: (i, j)),
        scratch_shapes=[pltpu.VMEM((tm, hidden), w2_t.dtype)],  # persistent h
        compiler_params=pltpu.CompilerParams(
            # M is independent -> shard across TensorCores on v7x.
            # N carries the h scratch across steps -> must stay sequential.
            dimension_semantics=("parallel", "arbitrary"),
            vmem_limit_bytes=vmem_limit,
        ),
        cost_estimate=cost,
    )(x, w1_t, b1, w2_t, b2)


def xavier_uniform(key, fan_out, fan_in, dtype=jnp.float32):
    # Matches torch.nn.init.xavier_uniform_ for a (fan_out, fan_in) weight.
    limit = float(np.sqrt(6.0 / (fan_in + fan_out)))
    return jax.random.uniform(key, (fan_out, fan_in), dtype=dtype,
                              minval=-limit, maxval=limit)


def linear_bias_init(key, fan_in, fan_out, dtype=jnp.float32):
    # torch.nn.Linear default bias init: U(-1/sqrt(fan_in), 1/sqrt(fan_in))
    bound = float(1.0 / np.sqrt(fan_in))
    return jax.random.uniform(key, (fan_out,), dtype=dtype,
                              minval=-bound, maxval=bound)


if __name__ == "__main__":
    # Linear2(input_size -> hidden_size -> output_size) at TPU-friendly sizes:
    # all feature dims are multiples of 256 (full 256-wide MXU on v6e/v7x),
    # batch 1024 with tm=512 gives an even 2-step "parallel" M grid (one big
    # tile per TensorCore on v7x, amortizes per-step overhead everywhere).
    batch = 1024
    input_size = 256
    hidden_size = 256
    output_size = 256

    key = jax.random.PRNGKey(0)
    kx, kw1, kb1, kw2, kb2 = jax.random.split(key, 5)

    x = jax.random.normal(kx, (batch, input_size), dtype=jnp.float32)

    # Parameters (deterministic, in-script) — PyTorch weight layout is (out, in);
    # store transposed for the kernel.
    w1 = xavier_uniform(kw1, hidden_size, input_size)          # (hidden, in)
    b1 = linear_bias_init(kb1, input_size, hidden_size)        # (hidden,)
    w2 = xavier_uniform(kw2, output_size, hidden_size)         # (out, hidden)
    b2 = linear_bias_init(kb2, hidden_size, output_size)       # (out,)

    w1_t = w1.T                                                # (in, hidden)
    w2_t = w2.T                                                # (hidden, out)
    b1_2d = b1.reshape(1, hidden_size)
    b2_2d = b2.reshape(1, output_size)

    # Exact f32 reference in numpy (same math as the PyTorch forward).
    x_np = np.asarray(x)
    y_ref = (x_np @ np.asarray(w1_t) + np.asarray(b1)) @ np.asarray(w2_t) \
            + np.asarray(b2)

    # ---- f32 path: correctness check ---------------------------------------
    y = linear2_forward(x, w1_t, b1_2d, w2_t, b2_2d, block_m=512)
    y = jax.block_until_ready(y)
    # Tolerance covers multi-pass bf16 emulation of f32 on the MXU.
    np.testing.assert_allclose(np.asarray(y), y_ref, rtol=1e-2, atol=1e-2)

    # ---- bf16 path: production/throughput path (f32 MXU accumulation) ------
    # Note: h is rounded to bf16 before the second dot (matches the bf16
    # weight dtype for full MXU rate) — hence the loose tolerance vs f32 ref.
    x_bf = x.astype(jnp.bfloat16)
    w1_bf = w1_t.astype(jnp.bfloat16)
    w2_bf = w2_t.astype(jnp.bfloat16)
    y_bf = linear2_forward(x_bf, w1_bf, b1_2d, w2_bf, b2_2d, block_m=512)
    y_bf = jax.block_until_ready(y_bf)
    np.testing.assert_allclose(np.asarray(y_bf).astype(np.float32), y_ref,
                               rtol=2e-1, atol=2e-1)

    print("KERNEL_OK")
</pallas_src>

<mosaic_0001>
module attributes {stable_mosaic.version = 11 : i64} {
  func.func @linear2_kernel(%arg0: i32, %arg1: i32, %arg2: memref<512x256xf32, #tpu.memory_space<vmem>>, %arg3: memref<256x256xf32, #tpu.memory_space<vmem>>, %arg4: memref<1x256xf32, #tpu.memory_space<vmem>>, %arg5: memref<256x256xf32, #tpu.memory_space<vmem>>, %arg6: memref<1x256xf32, #tpu.memory_space<vmem>>, %arg7: memref<512x256xf32, #tpu.memory_space<vmem>>, %arg8: memref<512x256xf32, #tpu.memory_space<vmem>>) attributes {dimension_semantics = [#tpu.dimension_semantics<parallel>, #tpu.dimension_semantics<arbitrary>], iteration_bounds = array<i64: 2, 1>, scalar_prefetch = 0 : i64, scratch_operands = 1 : i64, tpu.core_type = #tpu.core_type<tc>, window_params = [{transform_indices = @transform_0, window_bounds = array<i64: 512, 256>}, {pipeline_mode = #tpu.pipeline_mode<synchronous>, transform_indices = @transform_1, window_bounds = array<i64: 256, 256>}, {pipeline_mode = #tpu.pipeline_mode<synchronous>, transform_indices = @transform_2, window_bounds = array<i64: 1, 256>}, {pipeline_mode = #tpu.pipeline_mode<synchronous>, transform_indices = @transform_3, window_bounds = array<i64: 256, 256>}, {pipeline_mode = #tpu.pipeline_mode<synchronous>, transform_indices = @transform_4, window_bounds = array<i64: 1, 256>}, {transform_indices = @transform_5, window_bounds = array<i64: 512, 256>}]} {
    %c0_i32 = arith.constant 0 : i32
    %0 = arith.cmpi eq, %arg1, %c0_i32 : i32
    %1 = arith.extui %0 : i1 to i32
    %c0_i32_0 = arith.constant 0 : i32
    %2 = arith.cmpi ne, %1, %c0_i32_0 : i32
    scf.if %2 {
      %c0_8 = arith.constant 0 : index
      %c0_9 = arith.constant 0 : index
      %10 = vector.load %arg2[%c0_8, %c0_9] : memref<512x256xf32, #tpu.memory_space<vmem>>, vector<512x256xf32>
      %c0_10 = arith.constant 0 : index
      %c0_11 = arith.constant 0 : index
      %11 = vector.load %arg3[%c0_10, %c0_11] : memref<256x256xf32, #tpu.memory_space<vmem>>, vector<256x256xf32>
      %cst_12 = arith.constant dense<0.000000e+00> : vector<512x256xf32>
      %12 = tpu.matmul %10, %11, %cst_12 {dimension_numbers = #tpu.dot_dimension_numbers<[1], [0], [0], [1], [0, 0, 1, 1], [], []>} : vector<512x256xf32>, vector<256x256xf32>, vector<512x256xf32> -> vector<512x256xf32>
      %c0_13 = arith.constant 0 : index
      %c0_14 = arith.constant 0 : index
      %13 = vector.load %arg4[%c0_13, %c0_14] : memref<1x256xf32, #tpu.memory_space<vmem>>, vector<1x256xf32>
      %14 = vector.broadcast %13 : vector<1x256xf32> to vector<512x256xf32>
      %15 = arith.addf %12, %14 : vector<512x256xf32>
      %c0_15 = arith.constant 0 : index
      %c0_16 = arith.constant 0 : index
      %16 = vector.load %arg8[%c0_15, %c0_16] : memref<512x256xf32, #tpu.memory_space<vmem>>, vector<512x256xf32>
      tpu.vector_store %arg8[%c0_15, %c0_16], %15 {strides = array<i32>} : memref<512x256xf32, #tpu.memory_space<vmem>>, vector<512x256xf32>,
    } else {
    }
    %c0 = arith.constant 0 : index
    %c0_1 = arith.constant 0 : index
    %3 = vector.load %arg8[%c0, %c0_1] : memref<512x256xf32, #tpu.memory_space<vmem>>, vector<512x256xf32>
    %c0_2 = arith.constant 0 : index
    %c0_3 = arith.constant 0 : index
    %4 = vector.load %arg5[%c0_2, %c0_3] : memref<256x256xf32, #tpu.memory_space<vmem>>, vector<256x256xf32>
    %cst = arith.constant dense<0.000000e+00> : vector<512x256xf32>
    %5 = tpu.matmul %3, %4, %cst {dimension_numbers = #tpu.dot_dimension_numbers<[1], [0], [0], [1], [0, 0, 1, 1], [], []>} : vector<512x256xf32>, vector<256x256xf32>, vector<512x256xf32> -> vector<512x256xf32>
    %c0_4 = arith.constant 0 : index
    %c0_5 = arith.constant 0 : index
    %6 = vector.load %arg6[%c0_4, %c0_5] : memref<1x256xf32, #tpu.memory_space<vmem>>, vector<1x256xf32>
    %7 = vector.broadcast %6 : vector<1x256xf32> to vector<512x256xf32>
    %8 = arith.addf %5, %7 : vector<512x256xf32>
    %c0_6 = arith.constant 0 : index
    %c0_7 = arith.constant 0 : index
    %9 = vector.load %arg7[%c0_6, %c0_7] : memref<512x256xf32, #tpu.memory_space<vmem>>, vector<512x256xf32>
    tpu.vector_store %arg7[%c0_6, %c0_7], %8 {strides = array<i32>} : memref<512x256xf32, #tpu.memory_space<vmem>>, vector<512x256xf32>,
    return
  }
  func.func @transform_0(%arg0: i32, %arg1: i32) -> (i32, i32) {
    %c0_i32 = arith.constant 0 : i32
    %c0_i32_0 = arith.constant 0 : i32
    return %arg0, %c0_i32 : i32, i32
  }
  func.func @transform_1(%arg0: i32, %arg1: i32) -> (i32, i32) {
    %c0_i32 = arith.constant 0 : i32
    %c0_i32_0 = arith.constant 0 : i32
    %c0_i32_1 = arith.constant 0 : i32
    return %c0_i32, %c0_i32_0 : i32, i32
  }
  func.func @transform_2(%arg0: i32, %arg1: i32) -> (i32, i32) {
    %c0_i32 = arith.constant 0 : i32
    %c0_i32_0 = arith.constant 0 : i32
    %c0_i32_1 = arith.constant 0 : i32
    return %c0_i32, %c0_i32_0 : i32, i32
  }
  func.func @transform_3(%arg0: i32, %arg1: i32) -> (i32, i32) {
    %c0_i32 = arith.constant 0 : i32
    %c0_i32_0 = arith.constant 0 : i32
    return %c0_i32, %arg1 : i32, i32
  }
  func.func @transform_4(%arg0: i32, %arg1: i32) -> (i32, i32) {
    %c0_i32 = arith.constant 0 : i32
    %c0_i32_0 = arith.constant 0 : i32
    return %c0_i32, %arg1 : i32, i32
  }
  func.func @transform_5(%arg0: i32, %arg1: i32) -> (i32, i32) {
    %c0_i32 = arith.constant 0 : i32
    return %arg0, %arg1 : i32, i32
  }
}

</mosaic_0001>

<bundles_post_ra>
// kernel: tpu_custom_call.1
= control target key start
LH: loop header
LB: loop body
LE: loop exit
PB: predicated region body
PF: predicated region fallthrough
CT: control target
= control target key end

     0   :  { %10 = vsyncpa [#allocation4], 0  ;;  %s3282_s0 = inlined_call_operand.hbm [shape: f32[1024,256], index: 0, kind: input, shape index: {}]   ;;  %s3283_s1 = inlined_call_operand.hbm [shape: f32[256,256], index: 1, kind: input, shape index: {}]   ;;  %s3284_s2 = inlined_call_operand.vmem [shape: f32[1,256], index: 2, kind: input, shape index: {}]   ;;  %s3285_s3 = inlined_call_operand.hbm [shape: f32[256,256], index: 3, kind: input, shape index: {}]   ;;  %s3286_s4 = inlined_call_operand.vmem [shape: f32[1,256], index: 4, kind: input, shape index: {}]   ;;  %s3287_s5 = inlined_call_operand.hbm [shape: f32[1024,256], index: 5, kind: output, shape index: {}]  }
   0x1   :  { %12 = vsyncpa [#allocation4 + $0x1], 0 }
   0x2   :  { %13 = vsyncpa [#allocation7], 0 }
   0x3   :  { %14 = vsyncpa [#allocation5], 0 }
   0x4   :  { %16 = vsyncpa [#allocation5 + $0x1], 0  ;;  %s2471_s18 = smov 0   ;;  %s2473_s19 = smov 0  }
   0x5   :  { %s2475_s20 = smov 0   ;;  %s2477_s21 = smov 0  }
   0x6   :  { %s2479_s22 = smov 0   ;;  %s2481_s23 = smov 0  }
   0x7 LB: > { %s2018_s24 = sadd.s32 4294967295, %s2431_s23   ;;  %s2019_s25 = sadd.s32 4294967294, %s2431_s23   ;;  %s2431_s23 = sphi %s2481_s23, %s22_s23   ;;  %s2427_s22 = sphi %s2479_s22, %s3311_s22   ;;  %s2423_s21 = sphi %s2477_s21, %s3310_s21   ;;  %s2419_s20 = sphi %s2475_s20, %s3309_s20   ;;  %s2415_s19 = sphi %s2473_s19, %s3308_s19   ;;  %s2411_s18 = sphi %s2471_s18, %s3307_s18  }
   0x8   : > { %p54_p0 = scmp.ne.s32.totalorder %s2415_s19, %s2411_s18  ;;  %p2505_p1 = scmp.eq.s32.totalorder %s2018_s24, 0 }
   0x9   : > { %p2509_p2 = scmp.eq.s32.totalorder %s2018_s24, 1  ;;  %p180_p3 = scmp.eq.s32.totalorder %s2019_s25, 1 }
   0xa   : > { %s3293_s26 = scalar_select %p2505_p1, 1, 0 }
   0xb   : > { %p2515_p4 = por %p2505_p1, %p54_p0  ;;  %p2020_p5 = scmp.ge.s32.totalorder %s2431_s23, 1 }
   0xc   : > { %p2520_p6 = por %p180_p3, %p54_p0  ;;  %p187_p7 = scmp.lt.s32.totalorder %s2431_s23, 3 }
   0xd   : > { %s3295_s28 = scalar_select %p2515_p4, 1, 0 }
   0xe   : > { %s3296_s29 = scalar_select %p2520_p6, 1, 0 }
   0xf   : > { %p2525_p8 = pnand %p2020_p5, %p187_p7  ;;  %s2433_s6 = smov [#allocation6]  }
  0x10   : > { %s199_s7 = sshll.u32 %s2433_s6, 4  ;;  %s2434_s9 = smov [#allocation8]   ;;  %s2529_s7 = int_to_ptr.vmem [resolvable:$true] %s199_s7 }
  0x11   : > { %p2184_p9 = pneg %p2525_p8  ;;  %s218_s10 = sshll.u32 %s2434_s9, 4  ;;  %s2540_s10 = int_to_ptr.vmem [resolvable:$true] %s218_s10 }
  0x12   : > { %s2259_s13 = scalar_lea.hbm %s3283_s1, 8192 }
  0x13   : > { %p2536_p11 = pnand %p2184_p9, %p2505_p1  ;;  %p2260_p12 = scmp.ne.s32.totalorder %s3283_s1, %s2259_s13 }
  0x14   : > { %p2266_p5 = scmp.lt.u32.totalorder %s2259_s13, %s3283_s1 }
  0x15   : > { %p2261_p13 = pneg %p2536_p11 }
  0x17   : > { %p2262_p0 = pnand %p2261_p13, %p2260_p12 }
  0x19   : > { %p2263_p3 = pneg %p2262_p0 }
  0x1b   : > { %p2268_p7 = pnand %p2266_p5, %p2263_p3 }
  0x1d   : > { %2271 = shalt.err (!%p2268_p7)
}
  0x1e   : > { %s2272_s24 = scalar_lea.vmem %s2529_s7, 8192  ;;  %p2280_p1 = scmp.lt.s32.totalorder %s2529_s7, %s2529_s7 }
  0x1f   : > { %p2273_p9 = scmp.ne.s32.totalorder %s2529_s7, %s2272_s24  ;;  %p2281_p12 = scmp.lt.s32.totalorder %s2272_s24, %s2272_s24 }
  0x21   : > { %p2275_p10 = pnand %p2273_p9, %p2261_p13  ;;  %p2282_p0 = por %p2281_p12, %p2280_p1 }
  0x23   : > { %p2276_p6 = pneg %p2275_p10 }
  0x25   : > { %p2283_p4 = pnand %p2282_p0, %p2276_p6 }
  0x27   : > { %2286 = shalt.err (!%p2283_p4)
}
  0x28   : > { %s3291_s25 = smov 256   ;;  %s2436_s6 = smov 16  }
  0x29   : > { %2187 = dma.hbm_to_vmem [thread:$0]  (!%p2536_p11), %s3283_s1, 8192, %s2529_s7, [#allocation7], %s3291_s25, %s3291_s25, %s2436_s6  }
  0x2a   : > { %s2287_s14 = scalar_lea.hbm %s3285_s3, 8192 }
  0x2b   : > { %p2288_p1 = scmp.ne.s32.totalorder %s3285_s3, %s2287_s14  ;;  %p2294_p10 = scmp.lt.u32.totalorder %s2287_s14, %s3285_s3 }
  0x2d   : > { %p2290_p4 = pnand %p2288_p1, %p2261_p13 }
  0x2f   : > { %p2291_p6 = pneg %p2290_p4 }
  0x31   : > { %p2296_p3 = pnand %p2294_p10, %p2291_p6 }
  0x33   : > { %2299 = shalt.err (!%p2296_p3)
}
  0x34   : > { %s2300_s7 = scalar_lea.vmem %s2540_s10, 8192  ;;  %p2308_p12 = scmp.lt.s32.totalorder %s2540_s10, %s2540_s10 }
  0x35   : > { %p2301_p5 = scmp.ne.s32.totalorder %s2540_s10, %s2300_s7  ;;  %p2309_p0 = scmp.lt.s32.totalorder %s2300_s7, %s2300_s7 }
  0x37   : > { %p2303_p7 = pnand %p2301_p5, %p2261_p13  ;;  %p2310_p1 = por %p2309_p0, %p2308_p12 }
  0x39   : > { %p2304_p9 = pneg %p2303_p7 }
  0x3b   : > { %p2311_p4 = pnand %p2310_p1, %p2304_p9 }
  0x3d   : > { %2314 = shalt.err (!%p2311_p4)
}
  0x3e   : > { %2190 = dma.hbm_to_vmem [thread:$0]  (!%p2536_p11), %s3285_s3, 8192, %s2540_s10, [#allocation7], %s3291_s25, %s3291_s25, %s2436_s6  }
  0x3f   : > { %s34_s8 = sadd.s32 1, %s2427_s22  ;;  %s41_s12 = sadd.s32 1, %s2419_s20 }
  0x40   : > { %p36_p13 = scmp.ge.s32.totalorder %s34_s8, 2  ;;  %p48_p6 = scmp.ne.s32.totalorder %s2419_s20, %s2415_s19 }
  0x41   : > { %p49_p10 = scmp.eq.s32.totalorder %s2431_s23, 0  ;;  %p2201_p3 = scmp.lt.s32.totalorder %s2431_s23, 2 }
  0x42   : > { %s3313_s8 = smov (%p36_p13, %s34_s8), 0  ;;  %p2610_p7 = por %p2509_p2, %p48_p6 }
  0x43   : > { %p50_p5 = por %p49_p10, %p48_p6  ;;  %s38_s14 = ssub.s32 %s2427_s22, %s3313_s8 }
  0x44   : > { %s3299_s13 = scalar_select %p2610_p7, 1, 0 }
  0x45   : > { %s240_s15 = sand.u32 1, %s2419_s20   ;;  %p39_p9 = scmp.eq.s32.totalorder %s38_s14, 0 }
  0x46   : > { %s2025_s10 = sshll.u32 %s240_s15, 10  ;;  %s2041_s16 = sshll.u32 %s2427_s22, 14 }
  0x47   : > { %s2619_s17 = scalar_select %p39_p9, %s2419_s20, %s41_s12  }
  0x48   : > { %s2624_s9 = scalar_lea.hbm %s3282_s0, %s2041_s16  ;;  %s244_s27 = scalar_lea.vmem [#allocation3], %s2025_s10 }
  0x49   : > { %s252_s11 = sshll.u32 %s244_s27, 4  ;;  %p2628_p2 = pnand %p2201_p3, %p50_p5  ;;  %s2632_s11 = int_to_ptr.vmem [resolvable:$true] %s252_s11 }
  0x4a   : > { %s2634_s12 = scalar_lea.sflag [#allocation4], %s240_s15  ;;  %s2315_s14 = scalar_lea.hbm %s2624_s9, 16384 }
  0x4b   : > { %p2316_p11 = scmp.ne.s32.totalorder %s2624_s9, %s2315_s14  ;;  %p2317_p12 = pneg %p2628_p2 }
  0x4c   : > { %s2320_s24 = scalar_lea.hbm %s3282_s0, 32768  ;;  %p2321_p4 = scmp.lt.u32.totalorder %s2624_s9, %s3282_s0 }
  0x4d   : > { %p2318_p0 = pnand %p2317_p12, %p2316_p11  ;;  %p2322_p13 = scmp.lt.u32.totalorder %s2320_s24, %s2315_s14 }
  0x4e   : > { %p2324_p10 = scmp.lt.u32.totalorder %s2315_s14, %s2624_s9 }
  0x4f   : > { %p2319_p1 = pneg %p2318_p0  ;;  %p2323_p6 = por %p2322_p13, %p2321_p4 }
  0x51   : > { %p2325_p3 = por %p2324_p10, %p2323_p6 }
  0x53   : > { %p2326_p5 = pnand %p2325_p3, %p2319_p1 }
  0x55   : > { %2329 = shalt.err (!%p2326_p5)
}
  0x56   : > { %s2330_s15 = scalar_lea.vmem %s2632_s11, 16384  ;;  %s2437_s10 = smov [#allocation3]  }
  0x57   : > { %p2331_p9 = scmp.ne.s32.totalorder %s2632_s11, %s2330_s15  ;;  %s2335_s16 = sshll.u32 %s2437_s10, 4  ;;  %s2336_s16 = int_to_ptr.vmem [resolvable:$false] %s2335_s16 }
  0x58   : > { %s2337_s7 = scalar_lea.vmem %s2336_s16, 32768  ;;  %p2338_p7 = scmp.lt.s32.totalorder %s2632_s11, %s2336_s16 }
  0x59   : > { %p2333_p11 = pnand %p2331_p9, %p2317_p12  ;;  %p2339_p4 = scmp.lt.s32.totalorder %s2337_s7, %s2330_s15 }
  0x5b   : > { %p2334_p0 = pneg %p2333_p11  ;;  %p2340_p13 = por %p2339_p4, %p2338_p7 }
  0x5d   : > { %p2341_p6 = pnand %p2340_p13, %p2334_p0 }
  0x5f   : > { %2344 = shalt.err (!%p2341_p6)
}
  0x60   : > { %s3301_s14 = smov 256   ;;  %264 = sbr.rel (%p2525_p8) target bundleno = 872 (0x368), region = 40 }
  0x61   : > { %2194 = dma.hbm_to_vmem [thread:$0]  (!%p2628_p2), %s2624_s9, 16384, %s2632_s11, %s2634_s12, %s3301_s14, %s3301_s14, %s2436_s6  }
  0x62   : > { %s2668_s24 = sand.u32 (!%p2525_p8), 1, %s2415_s19   ;;  %p3302_p7 = scmp.ne.s32.totalorder (!%p2525_p8), %s3295_s28, 0 }
  0x63   : > { %s2030_s27 = sshll.u32 (!%p2525_p8), %s2668_s24, 10  ;;  %s267_s15 = scalar_lea.sflag (!%p2525_p8), [#allocation4], %s2668_s24 }
  0x64   : > { %s2674_s25 = scalar_lea.vmem (!%p2525_p8), [#allocation3], %s2030_s27 }
  0x67   : > { %2398 = dma.done.wait (%p3302_p7), %s267_s15, 16384  }
  0x68   : > { %2400 = vsyncadd (%p3302_p7), %s267_s15, 4294950912  ;;  %p3303_p2 = scmp.ne.s32.totalorder %s3293_s26, 0 }
  0x6a   : > { %2402 = dma.done.wait (%p3303_p2), [#allocation7], 16384  }
  0x6b   : > { %2404 = vsyncadd (%p3303_p2), [#allocation7], 4294950912  ;;  %v451_v0 = vld [vmem:[#allocation6 + $0x8] sm:$0xff]  ;;  %v453_v1 = vld [vmem:[#allocation6 + $0x18] sm:$0xff]  ;;  %s2952_s9 = scalar_lea.vmem [#allocation9], %s2030_s27  ;;  %s2043_s11 = sshll.u32 %s2423_s21, 14 }
  0x6c   : > { %v450_v2 = vld [vmem:[#allocation6] sm:$0xff]  ;;  %v2044_v3 = vpack.c.bf16 %v453_v1, %v451_v0  ;;  %v452_v4 = vld [vmem:[#allocation6 + $0x10] sm:$0xff]  ;;  %v455_v5 = vld [vmem:[#allocation6 + $0x28] sm:$0xff]  ;;  %s1901_s12 = sshll.u32 %s2952_s9, 4  ;;  %s3228_s7 = scalar_lea.hbm %s3287_s5, %s2043_s11  ;;  %s3230_s12 = int_to_ptr.vmem [resolvable:$true] %s1901_s12 }
  0x6d   : > { %v457_v6 = vld [vmem:[#allocation6 + $0x38] sm:$0xff]  ;;  %v2046_v7 = vpack.c.bf16 %v452_v4, %v450_v2  ;;  %v454_v9 = vld [vmem:[#allocation6 + $0x20] sm:$0xff]  ;;  %v456_v10 = vld [vmem:[#allocation6 + $0x30] sm:$0xff]  ;;  %s1885_s21 = scalar_lea.sflag [#allocation5], %s2668_s24  ;;  %s2345_s14 = scalar_lea.vmem %s3230_s12, 16384 }
  0x6e   : > { %v2048_v8 = vpack.c.bf16 %v457_v6, %v455_v5  ;;  %v459_v11 = vld [vmem:[#allocation6 + $0x48] sm:$0xff]  ;;  %2045 = vmatprep.subr.bf16.mxu0 %v2044_v3  ;;  %v461_v12 = vld [vmem:[#allocation6 + $0x58] sm:$0xff]  ;;  %v2050_v13 = vpack.c.bf16 %v456_v10, %v454_v9  ;;  %v458_v15 = vld [vmem:[#allocation6 + $0x40] sm:$0xff]  ;;  %p2346_p8 = scmp.ne.s32.totalorder %s3230_s12, %s2345_s14  ;;  %p3304_p12 = scmp.ne.s32.totalorder %s3299_s13, 0 }
  0x6f   : > { %2047 = vmatpush1.bf16.msra.mxu0 %v2046_v7  ;;  %v2052_v14 = vpack.c.bf16 %v461_v12, %v459_v11  ;;  %v460_v16 = vld [vmem:[#allocation6 + $0x50] sm:$0xff]  ;;  %v463_v17 = vld [vmem:[#allocation6 + $0x68] sm:$0xff]  ;;  %v465_v18 = vld [vmem:[#allocation6 + $0x78] sm:$0xff]  ;;  %s2438_s27 = smov [#allocation9]  }
  0x70   : > { %2049 = vmatprep.subr.bf16.mxu0 %v2048_v8  ;;  %v2054_v19 = vpack.c.bf16 %v460_v16, %v458_v15  ;;  %v2056_v20 = vpack.c.bf16 %v465_v18, %v463_v17  ;;  %v462_v21 = vld [vmem:[#allocation6 + $0x60] sm:$0xff]  ;;  %v464_v22 = vld [vmem:[#allocation6 + $0x70] sm:$0xff]  ;;  %v467_v23 = vld [vmem:[#allocation6 + $0x88] sm:$0xff]  ;;  %p2347_p1 = pnand %p2346_p8, %p3304_p12  ;;  %s2349_s15 = sshll.u32 %s2438_s27, 4  ;;  %s2350_s15 = int_to_ptr.vmem [resolvable:$false] %s2349_s15 }
  0x71   : > { %v469_v24 = vld [vmem:[#allocation6 + $0x98] sm:$0xff]  ;;  %v2058_v25 = vpack.c.bf16 %v464_v22, %v462_v21  ;;  %v466_v27 = vld [vmem:[#allocation6 + $0x80] sm:$0xff]  ;;  %v468_v28 = vld [vmem:[#allocation6 + $0x90] sm:$0xff]  ;;  %p2352_p3 = scmp.lt.s32.totalorder %s3230_s12, %s2350_s15 }
  0x72   : > { %v2060_v26 = vpack.c.bf16 %v469_v24, %v467_v23  ;;  %v471_v29 = vld [vmem:[#allocation6 + $0xa8] sm:$0xff]  ;;  %v473_v30 = vld [vmem:[#allocation6 + $0xb8] sm:$0xff]  ;;  %v2062_v31 = vpack.c.bf16 %v468_v28, %v466_v27  ;;  %v470_v33 = vld [vmem:[#allocation6 + $0xa0] sm:$0xff]  ;;  %p2348_p10 = pneg %p2347_p1 }
  0x73   : > { %2051 = vmatpush1.bf16.msra.mxu0 %v2050_v13  ;;  %v2064_v32 = vpack.c.bf16 %v473_v30, %v471_v29  ;;  %v472_v34 = vld [vmem:[#allocation6 + $0xb0] sm:$0xff]  ;;  %v475_v35 = vld [vmem:[#allocation6 + $0xc8] sm:$0xff]  ;;  %v477_v36 = vld [vmem:[#allocation6 + $0xd8] sm:$0xff] }
  0x74   : > { %2053 = vmatprep.subr.bf16.mxu0 %v2052_v14  ;;  %v2066_v37 = vpack.c.bf16 %v472_v34, %v470_v33  ;;  %v2068_v38 = vpack.c.bf16 %v477_v36, %v475_v35  ;;  %v474_v39 = vld [vmem:[#allocation6 + $0xc0] sm:$0xff]  ;;  %v476_v40 = vld [vmem:[#allocation6 + $0xd0] sm:$0xff]  ;;  %v323_v41 = vld [vmem:[%s2674_s25 + $0x8] sm:$0xff] }
  0x75   : > { %v479_v42 = vld [vmem:[#allocation6 + $0xe8] sm:$0xff]  ;;  %v481_v43 = vld [vmem:[#allocation6 + $0xf8] sm:$0xff]  ;;  %590 = vmatprep.mubr.f32.mxu0 %v323_v41  ;;  %v2070_v44 = vpack.c.bf16 %v476_v40, %v474_v39  ;;  %v478_v46 = vld [vmem:[#allocation6 + $0xe0] sm:$0xff] }
  0x76   : > { %v2072_v45 = vpack.c.bf16 %v481_v43, %v479_v42  ;;  %v480_v47 = vld [vmem:[#allocation6 + $0xf0] sm:$0xff]  ;;  %v483_v48 = vld [vmem:[#allocation6 + $0x108] sm:$0xff]  ;;  %v485_v49 = vld [vmem:[#allocation6 + $0x118] sm:$0xff] }
  0x77   : > { %2055 = vmatpush1.bf16.msra.mxu0 %v2054_v19  ;;  %v2074_v50 = vpack.c.bf16 %v480_v47, %v478_v46  ;;  %v2076_v51 = vpack.c.bf16 %v485_v49, %v483_v48  ;;  %v482_v52 = vld [vmem:[#allocation6 + $0x100] sm:$0xff]  ;;  %v484_v53 = vld [vmem:[#allocation6 + $0x110] sm:$0xff]  ;;  %v487_v54 = vld [vmem:[#allocation6 + $0x128] sm:$0xff] }
  0x78   : > { %2057 = vmatprep.subr.bf16.mxu0 %v2056_v20  ;;  %v489_v55 = vld [vmem:[#allocation6 + $0x138] sm:$0xff]  ;;  %v2078_v56 = vpack.c.bf16 %v484_v53, %v482_v52  ;;  %v486_v58 = vld [vmem:[#allocation6 + $0x120] sm:$0xff]  ;;  %v488_v59 = vld [vmem:[#allocation6 + $0x130] sm:$0xff] }
  0x79   : > { %v2080_v57 = vpack.c.bf16 %v489_v55, %v487_v54  ;;  %v491_v60 = vld [vmem:[#allocation6 + $0x148] sm:$0xff]  ;;  %v493_v61 = vld [vmem:[#allocation6 + $0x158] sm:$0xff]  ;;  %v2082_v62 = vpack.c.bf16 %v488_v59, %v486_v58  ;;  %v490_v0 = vld [vmem:[#allocation6 + $0x140] sm:$0xff] }
  0x7a   : > { %v2084_v63 = vpack.c.bf16 %v493_v61, %v491_v60  ;;  %v492_v1 = vld [vmem:[#allocation6 + $0x150] sm:$0xff]  ;;  %v495_v2 = vld [vmem:[#allocation6 + $0x168] sm:$0xff]  ;;  %v497_v3 = vld [vmem:[#allocation6 + $0x178] sm:$0xff] }
  0x7b   : > { %2059 = vmatpush1.bf16.msra.mxu0 %v2058_v25  ;;  %v2086_v4 = vpack.c.bf16 %v492_v1, %v490_v0  ;;  %v2088_v5 = vpack.c.bf16 %v497_v3, %v495_v2  ;;  %v494_v6 = vld [vmem:[#allocation6 + $0x160] sm:$0xff]  ;;  %v496_v7 = vld [vmem:[#allocation6 + $0x170] sm:$0xff]  ;;  %v499_v8 = vld [vmem:[#allocation6 + $0x188] sm:$0xff] }
  0x7c   : > { %2061 = vmatprep.subr.bf16.mxu0 %v2060_v26  ;;  %v501_v9 = vld [vmem:[#allocation6 + $0x198] sm:$0xff]  ;;  %v2090_v10 = vpack.c.bf16 %v496_v7, %v494_v6  ;;  %v498_v12 = vld [vmem:[#allocation6 + $0x180] sm:$0xff]  ;;  %v500_v13 = vld [vmem:[#allocation6 + $0x190] sm:$0xff] }
  0x7d   : > { %v2092_v11 = vpack.c.bf16 %v501_v9, %v499_v8  ;;  %v503_v14 = vld [vmem:[#allocation6 + $0x1a8] sm:$0xff]  ;;  %v505_v15 = vld [vmem:[#allocation6 + $0x1b8] sm:$0xff]  ;;  %v2094_v16 = vpack.c.bf16 %v500_v13, %v498_v12  ;;  %v502_v18 = vld [vmem:[#allocation6 + $0x1a0] sm:$0xff] }
  0x7e   : > { %v2096_v17 = vpack.c.bf16 %v505_v15, %v503_v14  ;;  %v504_v19 = vld [vmem:[#allocation6 + $0x1b0] sm:$0xff]  ;;  %v507_v20 = vld [vmem:[#allocation6 + $0x1c8] sm:$0xff]  ;;  %v509_v21 = vld [vmem:[#allocation6 + $0x1d8] sm:$0xff] }
  0x7f   : > { %2063 = vmatpush1.bf16.msra.mxu0 %v2062_v31  ;;  %v2098_v22 = vpack.c.bf16 %v504_v19, %v502_v18  ;;  %v2100_v23 = vpack.c.bf16 %v509_v21, %v507_v20  ;;  %v506_v24 = vld [vmem:[#allocation6 + $0x1c0] sm:$0xff]  ;;  %v508_v25 = vld [vmem:[#allocation6 + $0x1d0] sm:$0xff]  ;;  %v511_v26 = vld [vmem:[#allocation6 + $0x1e8] sm:$0xff] }
  0x80   : > { %2065 = vmatprep.subr.bf16.mxu0 %v2064_v32  ;;  %v513_v27 = vld [vmem:[#allocation6 + $0x1f8] sm:$0xff]  ;;  %v2102_v28 = vpack.c.bf16 %v508_v25, %v506_v24  ;;  %v510_v30 = vld [vmem:[#allocation6 + $0x1e0] sm:$0xff]  ;;  %v512_v31 = vld [vmem:[#allocation6 + $0x1f0] sm:$0xff] }
  0x81   : > { %v2104_v29 = vpack.c.bf16 %v513_v27, %v511_v26  ;;  %v2106_v32 = vpack.c.bf16 %v512_v31, %v510_v30  ;;  %v322_v33 = vld [vmem:[%s2674_s25] sm:$0xff]  ;;  %v325_v34 = vld [vmem:[%s2674_s25 + $0x18] sm:$0xff]  ;;  %v324_v35 = vld [vmem:[%s2674_s25 + $0x10] sm:$0xff] }
  0x82   : > { %v327_v36 = vld [vmem:[%s2674_s25 + $0x28] sm:$0xff]  ;;  %v328_v39 = vld [vmem:[%s2674_s25 + $0x30] sm:$0xff]  ;;  %v330_v41 = vld [vmem:[%s2674_s25 + $0x40] sm:$0xff] }
  0x83   : > { %2067 = vmatpush1.bf16.msra.mxu0 %v2066_v37  ;;  %v326_v37 = vld [vmem:[%s2674_s25 + $0x20] sm:$0xff]  ;;  %v331_v40 = vld [vmem:[%s2674_s25 + $0x48] sm:$0xff]  ;;  %v333_v42 = vld [vmem:[%s2674_s25 + $0x58] sm:$0xff] }
  0x84   : > { %2069 = vmatprep.subr.bf16.mxu0 %v2068_v38  ;;  %v329_v38 = vld [vmem:[%s2674_s25 + $0x38] sm:$0xff]  ;;  %v332_v43 = vld [vmem:[%s2674_s25 + $0x50] sm:$0xff]  ;;  %v1232_v46 = vld [vmem:[#allocation8 + $0x8] sm:$0xff] }
  0x85   : > { %v1234_v47 = vld [vmem:[#allocation8 + $0x18] sm:$0xff]  ;;  %v336_v53 = vld [vmem:[%s2674_s25 + $0x70] sm:$0xff]  ;;  %v1236_v54 = vld [vmem:[#allocation8 + $0x28] sm:$0xff] }
  0x86   : > { %v337_v48 = vld [vmem:[%s2674_s25 + $0x78] sm:$0xff]  ;;  %v2108_v49 = vpack.c.bf16 %v1234_v47, %v1232_v46  ;;  %v1235_v58 = vld [vmem:[#allocation8 + $0x20] sm:$0xff]  ;;  %v1237_v59 = vld [vmem:[#allocation8 + $0x30] sm:$0xff] }
  0x87   : > { %2071 = vmatpush1.bf16.msra.mxu0 %v2070_v44  ;;  %v335_v44 = vld [vmem:[%s2674_s25 + $0x68] sm:$0xff]  ;;  %v1238_v55 = vld [vmem:[#allocation8 + $0x38] sm:$0xff]  ;;  %v2114_v60 = vpack.c.bf16 %v1237_v59, %v1235_v58  ;;  %v338_v61 = vld [vmem:[%s2674_s25 + $0x80] sm:$0xff] }
  0x88   : > { %2073 = vmatprep.subr.bf16.mxu0 %v2072_v45  ;;  %v334_v45 = vld [vmem:[%s2674_s25 + $0x60] sm:$0xff]  ;;  %2109 = vmatprep.subr.bf16.mxu1 %v2108_v49  ;;  %v341_v0 = vld [vmem:[%s2674_s25 + $0x98] sm:$0xff]  ;;  %v1241_v3 = vld [vmem:[#allocation8 + $0x50] sm:$0xff] }
  0x89   : > { %v1239_v2 = vld [vmem:[#allocation8 + $0x40] sm:$0xff]  ;;  %v1244_v6 = vld [vmem:[#allocation8 + $0x68] sm:$0xff]  ;;  %v1246_v7 = vld [vmem:[#allocation8 + $0x78] sm:$0xff] }
  0x8a   : > { %v343_v8 = vld [vmem:[%s2674_s25 + $0xa8] sm:$0xff]  ;;  %v2120_v9 = vpack.c.bf16 %v1246_v7, %v1244_v6  ;;  %v342_v13 = vld [vmem:[%s2674_s25 + $0xa0] sm:$0xff]  ;;  %v1250_v15 = vld [vmem:[#allocation8 + $0x98] sm:$0xff] }
  0x8b   : > { %2075 = vmatpush1.bf16.msra.mxu0 %v2074_v50  ;;  %v1231_v50 = vld [vmem:[#allocation8] sm:$0xff]  ;;  %v1248_v14 = vld [vmem:[#allocation8 + $0x88] sm:$0xff]  ;;  %v1249_v19 = vld [vmem:[#allocation8 + $0x90] sm:$0xff] }
  0x8c   : > { %2077 = vmatprep.subr.bf16.mxu0 %v2076_v51  ;;  %v1233_v51 = vld [vmem:[#allocation8 + $0x10] sm:$0xff]  ;;  %v1247_v18 = vld [vmem:[#allocation8 + $0x80] sm:$0xff]  ;;  %v347_v24 = vld [vmem:[%s2674_s25 + $0xc8] sm:$0xff] }
  0x8d   : > { %v2110_v52 = vpack.c.bf16 %v1233_v51, %v1231_v50  ;;  %v2126_v20 = vpack.c.bf16 %v1249_v19, %v1247_v18  ;;  %v344_v21 = vld [vmem:[%s2674_s25 + $0xb0] sm:$0xff]  ;;  %v1251_v26 = vld [vmem:[#allocation8 + $0xa0] sm:$0xff]  ;;  %v1256_v30 = vld [vmem:[#allocation8 + $0xc8] sm:$0xff] }
  0x8e   : > { %v1253_v27 = vld [vmem:[#allocation8 + $0xb0] sm:$0xff]  ;;  %v1258_v31 = vld [vmem:[#allocation8 + $0xd8] sm:$0xff]  ;;  %v1264_v46 = vld [vmem:[#allocation8 + $0x108] sm:$0xff] }
  0x8f   : > { %2079 = vmatpush1.bf16.msra.mxu0 %v2078_v56  ;;  %2111 = vmatpush1.bf16.msra.mxu1 %v2110_v52  ;;  %v339_v56 = vld [vmem:[%s2674_s25 + $0x88] sm:$0xff]  ;;  %v1266_v47 = vld [vmem:[#allocation8 + $0x118] sm:$0xff]  ;;  %v1263_v50 = vld [vmem:[#allocation8 + $0x100] sm:$0xff] }
  0x90   : > { %2081 = vmatprep.subr.bf16.mxu0 %v2080_v57  ;;  %v2112_v57 = vpack.c.bf16 %v1238_v55, %v1236_v54  ;;  %v2140_v49 = vpack.c.bf16 %v1266_v47, %v1264_v46  ;;  %v1265_v51 = vld [vmem:[#allocation8 + $0x110] sm:$0xff]  ;;  %v1268_v54 = vld [vmem:[#allocation8 + $0x128] sm:$0xff]  ;;  %v1270_v55 = vld [vmem:[#allocation8 + $0x138] sm:$0xff] }
  0x91   : > { %v2142_v52 = vpack.c.bf16 %v1265_v51, %v1263_v50  ;;  %v1267_v58 = vld [vmem:[#allocation8 + $0x120] sm:$0xff]  ;;  %v1269_v59 = vld [vmem:[#allocation8 + $0x130] sm:$0xff]  ;;  %v1276_v6 = vld [vmem:[#allocation8 + $0x168] sm:$0xff] }
  0x92   : > { %2113 = vmatprep.subr.bf16.mxu1 %v2112_v57  ;;  %v2144_v57 = vpack.c.bf16 %v1270_v55, %v1268_v54  ;;  %v1278_v7 = vld [vmem:[#allocation8 + $0x178] sm:$0xff]  ;;  %v1279_v18 = vld [vmem:[#allocation8 + $0x180] sm:$0xff]  ;;  %v1281_v19 = vld [vmem:[#allocation8 + $0x190] sm:$0xff] }
  0x93   : > { %2083 = vmatpush1.bf16.msra.mxu0 %v2082_v62  ;;  %2115 = vmatpush1.bf16.msra.mxu1 %v2114_v60  ;;  %v1240_v62 = vld [vmem:[#allocation8 + $0x48] sm:$0xff]  ;;  %v2146_v60 = vpack.c.bf16 %v1269_v59, %v1267_v58  ;;  %v369_v46 = vld [vmem:[%s2674_s25 + $0x178] sm:$0xff]  ;;  %v368_v47 = vld [vmem:[%s2674_s25 + $0x170] sm:$0xff] }
  0x94   : > { %2085 = vmatprep.subr.bf16.mxu0 %v2084_v63  ;;  %v1242_v63 = vld [vmem:[#allocation8 + $0x58] sm:$0xff]  ;;  %v372_v51 = vld [vmem:[%s2674_s25 + $0x190] sm:$0xff] }
  0x95   : > { %v2116_v1 = vpack.c.bf16 %v1242_v63, %v1240_v62  ;;  %v1272_v62 = vld [vmem:[#allocation8 + $0x148] sm:$0xff]  ;;  %v1274_v63 = vld [vmem:[#allocation8 + $0x158] sm:$0xff]  ;;  %v376_v55 = vld [vmem:[%s2674_s25 + $0x1b0] sm:$0xff] }
  0x96   : > { %v373_v50 = vld [vmem:[%s2674_s25 + $0x198] sm:$0xff]  ;;  %v380_v59 = vld [vmem:[%s2674_s25 + $0x1d0] sm:$0xff] }
  0x97   : > { %2087 = vmatpush1.bf16.msra.mxu0 %v2086_v4  ;;  %v2118_v4 = vpack.c.bf16 %v1241_v3, %v1239_v2  ;;  %2117 = vmatprep.subr.bf16.mxu1 %v2116_v1  ;;  %v2148_v1 = vpack.c.bf16 %v1274_v63, %v1272_v62  ;;  %v1271_v2 = vld [vmem:[#allocation8 + $0x140] sm:$0xff]  ;;  %v1273_v3 = vld [vmem:[#allocation8 + $0x150] sm:$0xff]  ;;  %v377_v54 = vld [vmem:[%s2674_s25 + $0x1b8] sm:$0xff] }
  0x98   : > { %2089 = vmatprep.subr.bf16.mxu0 %v2088_v5  ;;  %v340_v5 = vld [vmem:[%s2674_s25 + $0x90] sm:$0xff]  ;;  %v381_v58 = vld [vmem:[%s2674_s25 + $0x1d8] sm:$0xff] }
  0x99   : > { %2119 = vmatpush1.bf16.msra.mxu1 %v2118_v4  ;;  %v2150_v4 = vpack.c.bf16 %v1273_v3, %v1271_v2  ;;  %v385_v62 = vld [vmem:[%s2674_s25 + $0x1f8] sm:$0xff]  ;;  %v384_v63 = vld [vmem:[%s2674_s25 + $0x1f0] sm:$0xff] }
  0x9a   : > { %2121 = vmatprep.subr.bf16.mxu1 %v2120_v9  ;;  %v2152_v9 = vpack.c.bf16 %v1278_v7, %v1276_v6  ;;  %v389_v2 = vld [vmem:[%s2674_s25 + $0x218] sm:$0xff]  ;;  %v388_v3 = vld [vmem:[%s2674_s25 + $0x210] sm:$0xff] }
  0x9b   : > { %2091 = vmatpush1.bf16.msra.mxu0 %v2090_v10  ;;  %v1243_v10 = vld [vmem:[#allocation8 + $0x60] sm:$0xff]  ;;  %v393_v6 = vld [vmem:[%s2674_s25 + $0x238] sm:$0xff]  ;;  %v392_v7 = vld [vmem:[%s2674_s25 + $0x230] sm:$0xff] }
  0x9c   : > { %2093 = vmatprep.subr.bf16.mxu0 %v2092_v11  ;;  %v1245_v11 = vld [vmem:[#allocation8 + $0x70] sm:$0xff] }
  0x9d   : > { %v2122_v12 = vpack.c.bf16 %v1245_v11, %v1243_v10  ;;  %v1275_v10 = vld [vmem:[#allocation8 + $0x160] sm:$0xff]  ;;  %v1277_v11 = vld [vmem:[#allocation8 + $0x170] sm:$0xff] }
  0x9f   : > { %2095 = vmatpush1.bf16.msra.mxu0 %v2094_v16  ;;  %2123 = vmatpush1.bf16.msra.mxu1 %v2122_v12  ;;  %v345_v16 = vld [vmem:[%s2674_s25 + $0xb8] sm:$0xff]  ;;  %v2154_v12 = vpack.c.bf16 %v1277_v11, %v1275_v10  ;;  %v396_v11 = vld [vmem:[%s2674_s25 + $0x250] sm:$0xff] }
  0xa0   : > { %2097 = vmatprep.subr.bf16.mxu0 %v2096_v17  ;;  %v2124_v17 = vpack.c.bf16 %v1250_v15, %v1248_v14  ;;  %v1280_v14 = vld [vmem:[#allocation8 + $0x188] sm:$0xff]  ;;  %v1282_v15 = vld [vmem:[#allocation8 + $0x198] sm:$0xff] }
  0xa1   : > { %v397_v10 = vld [vmem:[%s2674_s25 + $0x258] sm:$0xff] }
  0xa2   : > { %2125 = vmatprep.subr.bf16.mxu1 %v2124_v17  ;;  %v2156_v17 = vpack.c.bf16 %v1282_v15, %v1280_v14  ;;  %v401_v14 = vld [vmem:[%s2674_s25 + $0x278] sm:$0xff]  ;;  %v400_v15 = vld [vmem:[%s2674_s25 + $0x270] sm:$0xff] }
  0xa3   : > { %2099 = vmatpush1.bf16.msra.mxu0 %v2098_v22  ;;  %2127 = vmatpush1.bf16.msra.mxu1 %v2126_v20  ;;  %v1252_v22 = vld [vmem:[#allocation8 + $0xa8] sm:$0xff]  ;;  %v2158_v20 = vpack.c.bf16 %v1281_v19, %v1279_v18  ;;  %v405_v18 = vld [vmem:[%s2674_s25 + $0x298] sm:$0xff]  ;;  %v404_v19 = vld [vmem:[%s2674_s25 + $0x290] sm:$0xff] }
  0xa4   : > { %2101 = vmatprep.subr.bf16.mxu0 %v2100_v23  ;;  %v1254_v23 = vld [vmem:[#allocation8 + $0xb8] sm:$0xff] }
  0xa5   : > { %v2128_v25 = vpack.c.bf16 %v1254_v23, %v1252_v22  ;;  %v1284_v22 = vld [vmem:[#allocation8 + $0x1a8] sm:$0xff]  ;;  %v1286_v23 = vld [vmem:[#allocation8 + $0x1b8] sm:$0xff] }
  0xa7   : > { %2103 = vmatpush1.bf16.msra.mxu0 %v2102_v28  ;;  %v2130_v28 = vpack.c.bf16 %v1253_v27, %v1251_v26  ;;  %2129 = vmatprep.subr.bf16.mxu1 %v2128_v25  ;;  %v2160_v25 = vpack.c.bf16 %v1286_v23, %v1284_v22  ;;  %v1283_v26 = vld [vmem:[#allocation8 + $0x1a0] sm:$0xff]  ;;  %v1285_v27 = vld [vmem:[#allocation8 + $0x1b0] sm:$0xff]  ;;  %v409_v22 = vld [vmem:[%s2674_s25 + $0x2b8] sm:$0xff] }
  0xa8   : > { %2105 = vmatprep.subr.bf16.mxu0 %v2104_v29  ;;  %v346_v29 = vld [vmem:[%s2674_s25 + $0xc0] sm:$0xff]  ;;  %v408_v23 = vld [vmem:[%s2674_s25 + $0x2b0] sm:$0xff] }
  0xa9   : > { %2131 = vmatpush1.bf16.msra.mxu1 %v2130_v28  ;;  %v2162_v28 = vpack.c.bf16 %v1285_v27, %v1283_v26  ;;  %v413_v26 = vld [vmem:[%s2674_s25 + $0x2d8] sm:$0xff]  ;;  %v412_v27 = vld [vmem:[%s2674_s25 + $0x2d0] sm:$0xff] }
  0xab   : > { %2107 = vmatpush1.bf16.msra.mxu0 %v2106_v32  ;;  %v349_v32 = vld [vmem:[%s2674_s25 + $0xd8] sm:$0xff] }
  0xae   : > { %591 = vmatmul.mubr.f32.vlgmr.msra.gmra.mrb[0].mxu0 %v322_v33  ;;  %v2132_v33 = vpack.c.bf16 %v1258_v31, %v1256_v30  ;;  %v1288_v30 = vld [vmem:[#allocation8 + $0x1c8] sm:$0xff]  ;;  %v1290_v31 = vld [vmem:[#allocation8 + $0x1d8] sm:$0xff] }
  0xaf   : > { %596 = vmatprep.mubr.f32.mxu0 %v325_v34  ;;  %v1255_v34 = vld [vmem:[#allocation8 + $0xc0] sm:$0xff] }
  0xb0   : > { %2133 = vmatprep.subr.bf16.mxu1 %v2132_v33  ;;  %v2164_v33 = vpack.c.bf16 %v1290_v31, %v1288_v30  ;;  %v417_v30 = vld [vmem:[%s2674_s25 + $0x2f8] sm:$0xff]  ;;  %v416_v31 = vld [vmem:[%s2674_s25 + $0x2f0] sm:$0xff] }
  0xb2   : > { %597 = vmatmul.mubr.f32.gmra.mrb[2].mxu0 %v324_v35  ;;  %v1257_v35 = vld [vmem:[#allocation8 + $0xd0] sm:$0xff] }
  0xb3   : > { %602 = vmatprep.mubr.f32.mxu0 %v327_v36  ;;  %v2134_v36 = vpack.c.bf16 %v1257_v35, %v1255_v34  ;;  %v1287_v34 = vld [vmem:[#allocation8 + $0x1c0] sm:$0xff]  ;;  %v1289_v35 = vld [vmem:[#allocation8 + $0x1d0] sm:$0xff] }
  0xb5   : > { %2135 = vmatpush1.bf16.msra.mxu1 %v2134_v36  ;;  %v2166_v36 = vpack.c.bf16 %v1289_v35, %v1287_v34  ;;  %v421_v34 = vld [vmem:[%s2674_s25 + $0x318] sm:$0xff]  ;;  %v420_v35 = vld [vmem:[%s2674_s25 + $0x310] sm:$0xff] }
  0xb6   : > { %603 = vmatmul.mubr.f32.gmra.mrb[4].mxu0 %v326_v37  ;;  %v348_v37 = vld [vmem:[%s2674_s25 + $0xd0] sm:$0xff] }
  0xb7   : > { %608 = vmatprep.mubr.f32.mxu0 %v329_v38  ;;  %v1260_v38 = vld [vmem:[#allocation8 + $0xe8] sm:$0xff] }
  0xba   : > { %609 = vmatmul.mubr.f32.gmra.mrb[6].mxu0 %v328_v39  ;;  %v1262_v39 = vld [vmem:[#allocation8 + $0xf8] sm:$0xff] }
  0xbb   : > { %614 = vmatprep.mubr.f32.mxu0 %v331_v40  ;;  %v351_v40 = vld [vmem:[%s2674_s25 + $0xe8] sm:$0xff] }
  0xbe   : > { %615 = vmatmul.mubr.f32.gmra.mrb[8].mxu0 %v330_v41  ;;  %v2136_v41 = vpack.c.bf16 %v1262_v39, %v1260_v38  ;;  %v1292_v38 = vld [vmem:[#allocation8 + $0x1e8] sm:$0xff]  ;;  %v1294_v39 = vld [vmem:[#allocation8 + $0x1f8] sm:$0xff] }
  0xbf   : > { %620 = vmatprep.mubr.f32.mxu0 %v333_v42  ;;  %v1259_v42 = vld [vmem:[#allocation8 + $0xe0] sm:$0xff] }
  0xc0   : > { %2137 = vmatprep.subr.bf16.mxu1 %v2136_v41  ;;  %v2168_v41 = vpack.c.bf16 %v1294_v39, %v1292_v38  ;;  %v516_v38 = vlaneseq  ;;  %v425_v39 = vld [vmem:[%s2674_s25 + $0x338] sm:$0xff] }
  0xc2   : > { %621 = vmatmul.mubr.f32.gmra.mrb[10].mxu0 %v332_v43  ;;  %v1261_v43 = vld [vmem:[#allocation8 + $0xf0] sm:$0xff] }
  0xc3   : > { %626 = vmatprep.mubr.f32.mxu0 %v335_v44  ;;  %v2138_v44 = vpack.c.bf16 %v1261_v43, %v1259_v42  ;;  %v1291_v42 = vld [vmem:[#allocation8 + $0x1e0] sm:$0xff]  ;;  %v1293_v43 = vld [vmem:[#allocation8 + $0x1f0] sm:$0xff] }
  0xc5   : > { %2139 = vmatpush1.bf16.msra.mxu1 %v2138_v44  ;;  %v2170_v44 = vpack.c.bf16 %v1293_v43, %v1291_v42  ;;  %v427_v42 = vld [vmem:[%s2674_s25 + $0x348] sm:$0xff]  ;;  %v426_v43 = vld [vmem:[%s2674_s25 + $0x340] sm:$0xff] }
  0xc6   : > { %627 = vmatmul.mubr.f32.gmra.mrb[12].mxu0 %v334_v45  ;;  %v350_v45 = vld [vmem:[%s2674_s25 + $0xe0] sm:$0xff]  ;;  %2141 = vmatprep.subr.bf16.mxu1 %v2140_v49 }
  0xc7   : > { %632 = vmatprep.mubr.f32.mxu0 %v337_v48  ;;  %v353_v48 = vld [vmem:[%s2674_s25 + $0xf8] sm:$0xff]  ;;  %v370_v49 = vld [vmem:[%s2674_s25 + $0x180] sm:$0xff] }
  0xc9   : > { %2143 = vmatpush1.bf16.msra.mxu1 %v2142_v52  ;;  %v375_v52 = vld [vmem:[%s2674_s25 + $0x1a8] sm:$0xff] }
  0xca   : > { %633 = vmatmul.mubr.f32.gmra.mrb[14].mxu0 %v336_v53  ;;  %v352_v53 = vld [vmem:[%s2674_s25 + $0xf0] sm:$0xff]  ;;  %2145 = vmatprep.subr.bf16.mxu1 %v2144_v57  ;;  %v378_v57 = vld [vmem:[%s2674_s25 + $0x1c0] sm:$0xff] }
  0xcb   : > { %638 = vmatprep.mubr.f32.mxu0 %v339_v56  ;;  %v355_v56 = vld [vmem:[%s2674_s25 + $0x108] sm:$0xff] }
  0xcd   : > { %2147 = vmatpush1.bf16.msra.mxu1 %v2146_v60  ;;  %v383_v60 = vld [vmem:[%s2674_s25 + $0x1e8] sm:$0xff] }
  0xce   : > { %639 = vmatmul.mubr.f32.gmra.mrb[16].mxu0 %v338_v61  ;;  %v354_v61 = vld [vmem:[%s2674_s25 + $0x100] sm:$0xff]  ;;  %2149 = vmatprep.subr.bf16.mxu1 %v2148_v1 }
  0xcf   : > { %644 = vmatprep.mubr.f32.mxu0 %v341_v0  ;;  %v357_v0 = vld [vmem:[%s2674_s25 + $0x118] sm:$0xff]  ;;  %v386_v1 = vld [vmem:[%s2674_s25 + $0x200] sm:$0xff] }
  0xd1   : > { %2151 = vmatpush1.bf16.msra.mxu1 %v2150_v4  ;;  %v391_v4 = vld [vmem:[%s2674_s25 + $0x228] sm:$0xff] }
  0xd2   : > { %645 = vmatmul.mubr.f32.gmra.mrb[18].mxu0 %v340_v5  ;;  %v356_v5 = vld [vmem:[%s2674_s25 + $0x110] sm:$0xff]  ;;  %2153 = vmatprep.subr.bf16.mxu1 %v2152_v9  ;;  %v394_v9 = vld [vmem:[%s2674_s25 + $0x240] sm:$0xff] }
  0xd3   : > { %650 = vmatprep.mubr.f32.mxu0 %v343_v8  ;;  %v359_v8 = vld [vmem:[%s2674_s25 + $0x128] sm:$0xff] }
  0xd5   : > { %2155 = vmatpush1.bf16.msra.mxu1 %v2154_v12  ;;  %v399_v12 = vld [vmem:[%s2674_s25 + $0x268] sm:$0xff] }
  0xd6   : > { %651 = vmatmul.mubr.f32.gmra.mrb[20].mxu0 %v342_v13  ;;  %v358_v13 = vld [vmem:[%s2674_s25 + $0x120] sm:$0xff]  ;;  %2157 = vmatprep.subr.bf16.mxu1 %v2156_v17 }
  0xd7   : > { %656 = vmatprep.mubr.f32.mxu0 %v345_v16  ;;  %v361_v16 = vld [vmem:[%s2674_s25 + $0x138] sm:$0xff]  ;;  %v402_v17 = vld [vmem:[%s2674_s25 + $0x280] sm:$0xff] }
  0xd9   : > { %2159 = vmatpush1.bf16.msra.mxu1 %v2158_v20  ;;  %v407_v20 = vld [vmem:[%s2674_s25 + $0x2a8] sm:$0xff] }
  0xda   : > { %657 = vmatmul.mubr.f32.gmra.mrb[22].mxu0 %v344_v21  ;;  %v360_v21 = vld [vmem:[%s2674_s25 + $0x130] sm:$0xff]  ;;  %2161 = vmatprep.subr.bf16.mxu1 %v2160_v25  ;;  %v410_v25 = vld [vmem:[%s2674_s25 + $0x2c0] sm:$0xff] }
  0xdb   : > { %662 = vmatprep.mubr.f32.mxu0 %v347_v24  ;;  %v363_v24 = vld [vmem:[%s2674_s25 + $0x148] sm:$0xff] }
  0xdd   : > { %2163 = vmatpush1.bf16.msra.mxu1 %v2162_v28  ;;  %v415_v28 = vld [vmem:[%s2674_s25 + $0x2e8] sm:$0xff] }
  0xde   : > { %663 = vmatmul.mubr.f32.gmra.mrb[24].mxu0 %v346_v29  ;;  %v362_v29 = vld [vmem:[%s2674_s25 + $0x140] sm:$0xff]  ;;  %2165 = vmatprep.subr.bf16.mxu1 %v2164_v33 }
  0xdf   : > { %668 = vmatprep.mubr.f32.mxu0 %v349_v32  ;;  %v365_v32 = vld [vmem:[%s2674_s25 + $0x158] sm:$0xff]  ;;  %v418_v33 = vld [vmem:[%s2674_s25 + $0x300] sm:$0xff] }
  0xe1   : > { %2167 = vmatpush1.bf16.msra.mxu1 %v2166_v36  ;;  %v423_v36 = vld [vmem:[%s2674_s25 + $0x328] sm:$0xff] }
  0xe2   : > { %669 = vmatmul.mubr.f32.gmra.mrb[26].mxu0 %v348_v37  ;;  %v364_v37 = vld [vmem:[%s2674_s25 + $0x150] sm:$0xff]  ;;  %2169 = vmatprep.subr.bf16.mxu1 %v2168_v41  ;;  %v2788_v41 = vshrl.u32 %v516_v38, 7 }
  0xe3   : > { %674 = vmatprep.mubr.f32.mxu0 %v351_v40  ;;  %v367_v40 = vld [vmem:[%s2674_s25 + $0x168] sm:$0xff] }
  0xe5   : > { %2171 = vmatpush1.bf16.msra.mxu1 %v2170_v44  ;;  %v522_v44 = vsub.s32 1, %v2788_v41 }
  0xe6   : > { %675 = vmatmul.mubr.f32.gmra.mrb[28].mxu0 %v350_v45  ;;  %v366_v45 = vld [vmem:[%s2674_s25 + $0x160] sm:$0xff] }
  0xe7   : > { %680 = vmatprep.mubr.f32.mxu0 %v353_v48  ;;  %v371_v48 = vld [vmem:[%s2674_s25 + $0x188] sm:$0xff] }
  0xea   : > { %681 = vmatmul.mubr.f32.gmra.mrb[30].mxu0 %v352_v53  ;;  %v374_v53 = vld [vmem:[%s2674_s25 + $0x1a0] sm:$0xff] }
  0xeb   : > { %686 = vmatprep.mubr.f32.mxu0 %v355_v56  ;;  %v379_v56 = vld [vmem:[%s2674_s25 + $0x1c8] sm:$0xff] }
  0xee   : > { %687 = vmatmul.mubr.f32.gmra.mrb[32].mxu0 %v354_v61  ;;  %v382_v61 = vld [vmem:[%s2674_s25 + $0x1e0] sm:$0xff] }
  0xef   : > { %692 = vmatprep.mubr.f32.mxu0 %v357_v0  ;;  %v387_v0 = vld [vmem:[%s2674_s25 + $0x208] sm:$0xff] }
  0xf2   : > { %693 = vmatmul.mubr.f32.gmra.mrb[34].mxu0 %v356_v5  ;;  %v390_v5 = vld [vmem:[%s2674_s25 + $0x220] sm:$0xff] }
  0xf3   : > { %698 = vmatprep.mubr.f32.mxu0 %v359_v8  ;;  %v395_v8 = vld [vmem:[%s2674_s25 + $0x248] sm:$0xff] }
  0xf6   : > { %699 = vmatmul.mubr.f32.gmra.mrb[36].mxu0 %v358_v13  ;;  %v398_v13 = vld [vmem:[%s2674_s25 + $0x260] sm:$0xff] }
  0xf7   : > { %704 = vmatprep.mubr.f32.mxu0 %v361_v16  ;;  %v403_v16 = vld [vmem:[%s2674_s25 + $0x288] sm:$0xff] }
  0xfa   : > { %705 = vmatmul.mubr.f32.gmra.mrb[38].mxu0 %v360_v21  ;;  %v406_v21 = vld [vmem:[%s2674_s25 + $0x2a0] sm:$0xff] }
  0xfb   : > { %710 = vmatprep.mubr.f32.mxu0 %v363_v24  ;;  %v411_v24 = vld [vmem:[%s2674_s25 + $0x2c8] sm:$0xff] }
  0xfe   : > { %711 = vmatmul.mubr.f32.gmra.mrb[40].mxu0 %v362_v29  ;;  %v414_v29 = vld [vmem:[%s2674_s25 + $0x2e0] sm:$0xff] }
  0xff   : > { %716 = vmatprep.mubr.f32.mxu0 %v365_v32  ;;  %v419_v32 = vld [vmem:[%s2674_s25 + $0x308] sm:$0xff] }
 0x102   : > { %717 = vmatmul.mubr.f32.gmra.mrb[42].mxu0 %v364_v37  ;;  %v422_v37 = vld [vmem:[%s2674_s25 + $0x320] sm:$0xff] }
 0x103   : > { %722 = vmatprep.mubr.f32.mxu0 %v367_v40  ;;  %v424_v40 = vld [vmem:[%s2674_s25 + $0x330] sm:$0xff] }
 0x106   : > { %723 = vmatmul.mubr.f32.gmra.mrb[44].mxu0 %v366_v45  ;;  %v514_v45 = vld [vmem:[%s3284_s2] sm:$0x3] }
 0x107   : > { %728 = vmatprep.mubr.f32.mxu0 %v369_v46  ;;  %v518_v46 = vsub.s32 0, %v2788_v41 }
 0x10a   : > { %729 = vmatmul.mubr.f32.gmra.mrb[46].mxu0 %v368_v47  ;;  %v429_v47 = vld [vmem:[%s2674_s25 + $0x358] sm:$0xff] }
 0x10b   : > { %734 = vmatprep.mubr.f32.mxu0 %v371_v48  ;;  %v428_v48 = vld [vmem:[%s2674_s25 + $0x350] sm:$0xff] }
 0x10e   : > { %735 = vmatmul.mubr.f32.gmra.mrb[48].mxu0 %v370_v49  ;;  %v2801_v49 = vrot.slane %v514_v45, %v522_v44 }
 0x10f   : > { %740 = vmatprep.mubr.f32.mxu0 %v373_v50  ;;  %v2805_v50 = vrot.slane %v514_v45, %v518_v46 }
 0x112   : > { %741 = vmatmul.mubr.f32.gmra.mrb[50].mxu0 %v372_v51  ;;  %v431_v51 = vld [vmem:[%s2674_s25 + $0x368] sm:$0xff] }
 0x113   : > { %746 = vmatprep.mubr.f32.mxu0 %v375_v52 }
 0x116   : > { %747 = vmatmul.mubr.f32.gmra.mrb[52].mxu0 %v374_v53 }
 0x117   : > { %752 = vmatprep.mubr.f32.mxu0 %v377_v54 }
 0x11a   : > { %753 = vmatmul.mubr.f32.gmra.mrb[54].mxu0 %v376_v55  ;;  %v430_v55 = vld [vmem:[%s2674_s25 + $0x360] sm:$0xff] }
 0x11b   : > { %758 = vmatprep.mubr.f32.mxu0 %v379_v56 }
 0x11e   : > { %759 = vmatmul.mubr.f32.gmra.mrb[56].mxu0 %v378_v57  ;;  %v433_v57 = vld [vmem:[%s2674_s25 + $0x378] sm:$0xff] }
 0x11f   : > { %764 = vmatprep.mubr.f32.mxu0 %v381_v58 }
 0x122   : > { %765 = vmatmul.mubr.f32.gmra.mrb[58].mxu0 %v380_v59 }
 0x123   : > { %770 = vmatprep.mubr.f32.mxu0 %v383_v60 }
 0x126   : > { %771 = vmatmul.mubr.f32.gmra.mrb[60].mxu0 %v382_v61  ;;  %v432_v61 = vld [vmem:[%s2674_s25 + $0x370] sm:$0xff] }
 0x127   : > { %776 = vmatprep.mubr.f32.mxu0 %v385_v62 }
 0x12a   : > { %777 = vmatmul.mubr.f32.gmra.mrb[62].mxu0 %v384_v63  ;;  %v435_v63 = vld [vmem:[%s2674_s25 + $0x388] sm:$0xff] }
 0x12b   : > { %782 = vmatprep.mubr.f32.mxu0 %v387_v0 }
 0x12e   : > { %783 = vmatmul.mubr.f32.gmra.mrb[64].mxu0 %v386_v1 }
 0x12f   : > { %788 = vmatprep.mubr.f32.mxu0 %v389_v2 }
 0x132   : > { %789 = vmatmul.mubr.f32.gmra.mrb[66].mxu0 %v388_v3  ;;  %v434_v3 = vld [vmem:[%s2674_s25 + $0x380] sm:$0xff] }
 0x133   : > { %794 = vmatprep.mubr.f32.mxu0 %v391_v4 }
 0x136   : > { %795 = vmatmul.mubr.f32.gmra.mrb[68].mxu0 %v390_v5  ;;  %v437_v5 = vld [vmem:[%s2674_s25 + $0x398] sm:$0xff] }
 0x137   : > { %800 = vmatprep.mubr.f32.mxu0 %v393_v6 }
 0x13a   : > { %801 = vmatmul.mubr.f32.gmra.mrb[70].mxu0 %v392_v7 }
 0x13b   : > { %806 = vmatprep.mubr.f32.mxu0 %v395_v8 }
 0x13e   : > { %807 = vmatmul.mubr.f32.gmra.mrb[72].mxu0 %v394_v9  ;;  %v436_v9 = vld [vmem:[%s2674_s25 + $0x390] sm:$0xff] }
 0x13f   : > { %812 = vmatprep.mubr.f32.mxu0 %v397_v10 }
 0x142   : > { %813 = vmatmul.mubr.f32.gmra.mrb[74].mxu0 %v396_v11  ;;  %v439_v11 = vld [vmem:[%s2674_s25 + $0x3a8] sm:$0xff] }
 0x143   : > { %818 = vmatprep.mubr.f32.mxu0 %v399_v12 }
 0x146   : > { %819 = vmatmul.mubr.f32.gmra.mrb[76].mxu0 %v398_v13 }
 0x147   : > { %824 = vmatprep.mubr.f32.mxu0 %v401_v14 }
 0x14a   : > { %825 = vmatmul.mubr.f32.gmra.mrb[78].mxu0 %v400_v15  ;;  %v438_v15 = vld [vmem:[%s2674_s25 + $0x3a0] sm:$0xff] }
 0x14b   : > { %830 = vmatprep.mubr.f32.mxu0 %v403_v16 }
 0x14e   : > { %831 = vmatmul.mubr.f32.gmra.mrb[80].mxu0 %v402_v17  ;;  %v441_v17 = vld [vmem:[%s2674_s25 + $0x3b8] sm:$0xff] }
 0x14f   : > { %836 = vmatprep.mubr.f32.mxu0 %v405_v18 }
 0x152   : > { %837 = vmatmul.mubr.f32.gmra.mrb[82].mxu0 %v404_v19 }
 0x153   : > { %842 = vmatprep.mubr.f32.mxu0 %v407_v20 }
 0x156   : > { %843 = vmatmul.mubr.f32.gmra.mrb[84].mxu0 %v406_v21  ;;  %v440_v21 = vld [vmem:[%s2674_s25 + $0x3b0] sm:$0xff] }
 0x157   : > { %848 = vmatprep.mubr.f32.mxu0 %v409_v22 }
 0x15a   : > { %849 = vmatmul.mubr.f32.gmra.mrb[86].mxu0 %v408_v23  ;;  %v443_v23 = vld [vmem:[%s2674_s25 + $0x3c8] sm:$0xff] }
 0x15b   : > { %854 = vmatprep.mubr.f32.mxu0 %v411_v24 }
 0x15e   : > { %855 = vmatmul.mubr.f32.gmra.mrb[88].mxu0 %v410_v25 }
 0x15f   : > { %860 = vmatprep.mubr.f32.mxu0 %v413_v26 }
 0x162   : > { %861 = vmatmul.mubr.f32.gmra.mrb[90].mxu0 %v412_v27  ;;  %v442_v27 = vld [vmem:[%s2674_s25 + $0x3c0] sm:$0xff] }
 0x163   : > { %866 = vmatprep.mubr.f32.mxu0 %v415_v28 }
 0x166   : > { %867 = vmatmul.mubr.f32.gmra.mrb[92].mxu0 %v414_v29  ;;  %v445_v29 = vld [vmem:[%s2674_s25 + $0x3d8] sm:$0xff] }
 0x167   : > { %872 = vmatprep.mubr.f32.mxu0 %v417_v30 }
 0x16a   : > { %873 = vmatmul.mubr.f32.gmra.mrb[94].mxu0 %v416_v31 }
 0x16b   : > { %878 = vmatprep.mubr.f32.mxu0 %v419_v32 }
 0x16e   : > { %879 = vmatmul.mubr.f32.gmra.mrb[96].mxu0 %v418_v33  ;;  %v444_v33 = vld [vmem:[%s2674_s25 + $0x3d0] sm:$0xff] }
 0x16f   : > { %884 = vmatprep.mubr.f32.mxu0 %v421_v34 }
 0x172   : > { %885 = vmatmul.mubr.f32.gmra.mrb[98].mxu0 %v420_v35  ;;  %v447_v35 = vld [vmem:[%s2674_s25 + $0x3e8] sm:$0xff] }
 0x173   : > { %890 = vmatprep.mubr.f32.mxu0 %v423_v36 }
 0x176   : > { %891 = vmatmul.mubr.f32.gmra.mrb[100].mxu0 %v422_v37 }
 0x177   : > { %896 = vmatprep.mubr.f32.mxu0 %v425_v39  ;;  %v446_v39 = vld [vmem:[%s2674_s25 + $0x3e0] sm:$0xff] }
 0x17a   : > { %897 = vmatmul.mubr.f32.gmra.mrb[102].mxu0 %v424_v40 }
 0x17b   : > { %902 = vmatprep.mubr.f32.mxu0 %v427_v42  ;;  %v449_v42 = vld [vmem:[%s2674_s25 + $0x3f8] sm:$0xff] }
 0x17e   : > { %903 = vmatmul.mubr.f32.gmra.mrb[104].mxu0 %v426_v43 }
 0x17f   : > { %908 = vmatprep.mubr.f32.mxu0 %v429_v47 }
 0x181   : > { %v592_v52 = vpop.f32.mrb[0].mxu0 }
 0x182   : > { %v594_v53 = vpop.f32.mrb[1].mxu0  ;;  %909 = vmatmul.mubr.f32.gmra.mrb[106].mxu0 %v428_v48  ;;  %v593_v56 = vadd.f32 %v592_v52, %v2805_v50  ;;  %v448_v48 = vld [vmem:[%s2674_s25 + $0x3f0] sm:$0xff]  ;;  %s2351_s25 = scalar_lea.vmem %s2350_s15, 32768 }
 0x183   : > { %914 = vmatprep.mubr.f32.mxu0 %v431_v51  ;;  %v595_v54 = vadd.f32 %v594_v53, %v2801_v49  ;;  %p2353_p5 = scmp.lt.s32.totalorder %s2351_s25, %s2345_s14 }
 0x185   : > { %v598_v58 = vpop.f32.mrb[2].mxu0  ;;  %1371 = vmatprep.mubr.f32.mxu1 %v595_v54  ;;  %p2354_p9 = por %p2353_p5, %p2352_p3 }
 0x186   : > { %v600_v59 = vpop.f32.mrb[3].mxu0  ;;  %915 = vmatmul.mubr.f32.gmra.mrb[108].mxu0 %v430_v55  ;;  %1372 = vmatmul.mubr.f32.vlgmr.msra.gmra.mrb[0].mxu1 %v593_v56  ;;  %v599_v62 = vadd.f32 %v598_v58, %v2805_v50 }
 0x187   : > { %v601_v60 = vadd.f32 %v600_v59, %v2801_v49  ;;  %920 = vmatprep.mubr.f32.mxu0 %v433_v57  ;;  %p2355_p11 = pnand %p2354_p9, %p2348_p10 }
 0x189   : > { %v604_v0 = vpop.f32.mrb[4].mxu0  ;;  %1377 = vmatprep.mubr.f32.mxu1 %v601_v60 }
 0x18a   : > { %v606_v1 = vpop.f32.mrb[5].mxu0  ;;  %921 = vmatmul.mubr.f32.gmra.mrb[110].mxu0 %v432_v61  ;;  %1378 = vmatmul.mubr.f32.gmra.mrb[2].mxu1 %v599_v62  ;;  %v605_v4 = vadd.f32 %v604_v0, %v2805_v50 }
 0x18b   : > { %v607_v2 = vadd.f32 %v606_v1, %v2801_v49  ;;  %926 = vmatprep.mubr.f32.mxu0 %v435_v63 }
 0x18d   : > { %v610_v6 = vpop.f32.mrb[6].mxu0  ;;  %1383 = vmatprep.mubr.f32.mxu1 %v607_v2 }
 0x18e   : > { %v612_v7 = vpop.f32.mrb[7].mxu0  ;;  %927 = vmatmul.mubr.f32.gmra.mrb[112].mxu0 %v434_v3  ;;  %1384 = vmatmul.mubr.f32.gmra.mrb[4].mxu1 %v605_v4  ;;  %v611_v10 = vadd.f32 %v610_v6, %v2805_v50 }
 0x18f   : > { %v613_v8 = vadd.f32 %v612_v7, %v2801_v49  ;;  %932 = vmatprep.mubr.f32.mxu0 %v437_v5 }
 0x191   : > { %v616_v12 = vpop.f32.mrb[8].mxu0  ;;  %1389 = vmatprep.mubr.f32.mxu1 %v613_v8 }
 0x192   : > { %v618_v13 = vpop.f32.mrb[9].mxu0  ;;  %933 = vmatmul.mubr.f32.gmra.mrb[114].mxu0 %v436_v9  ;;  %1390 = vmatmul.mubr.f32.gmra.mrb[6].mxu1 %v611_v10  ;;  %v617_v16 = vadd.f32 %v616_v12, %v2805_v50 }
 0x193   : > { %v619_v14 = vadd.f32 %v618_v13, %v2801_v49  ;;  %938 = vmatprep.mubr.f32.mxu0 %v439_v11 }
 0x195   : > { %v622_v18 = vpop.f32.mrb[10].mxu0  ;;  %1395 = vmatprep.mubr.f32.mxu1 %v619_v14 }
 0x196   : > { %v624_v19 = vpop.f32.mrb[11].mxu0  ;;  %939 = vmatmul.mubr.f32.gmra.mrb[116].mxu0 %v438_v15  ;;  %1396 = vmatmul.mubr.f32.gmra.mrb[8].mxu1 %v617_v16  ;;  %v623_v22 = vadd.f32 %v622_v18, %v2805_v50 }
 0x197   : > { %v625_v20 = vadd.f32 %v624_v19, %v2801_v49  ;;  %944 = vmatprep.mubr.f32.mxu0 %v441_v17 }
 0x199   : > { %v628_v24 = vpop.f32.mrb[12].mxu0  ;;  %1401 = vmatprep.mubr.f32.mxu1 %v625_v20 }
 0x19a   : > { %v630_v25 = vpop.f32.mrb[13].mxu0  ;;  %945 = vmatmul.mubr.f32.gmra.mrb[118].mxu0 %v440_v21  ;;  %1402 = vmatmul.mubr.f32.gmra.mrb[10].mxu1 %v623_v22  ;;  %v629_v28 = vadd.f32 %v628_v24, %v2805_v50 }
 0x19b   : > { %v631_v26 = vadd.f32 %v630_v25, %v2801_v49  ;;  %950 = vmatprep.mubr.f32.mxu0 %v443_v23 }
 0x19d   : > { %v634_v30 = vpop.f32.mrb[14].mxu0  ;;  %1407 = vmatprep.mubr.f32.mxu1 %v631_v26 }
 0x19e   : > { %v636_v31 = vpop.f32.mrb[15].mxu0  ;;  %951 = vmatmul.mubr.f32.gmra.mrb[120].mxu0 %v442_v27  ;;  %1408 = vmatmul.mubr.f32.gmra.mrb[12].mxu1 %v629_v28  ;;  %v635_v34 = vadd.f32 %v634_v30, %v2805_v50 }
 0x19f   : > { %v637_v32 = vadd.f32 %v636_v31, %v2801_v49  ;;  %956 = vmatprep.mubr.f32.mxu0 %v445_v29 }
 0x1a1   : > { %v640_v36 = vpop.f32.mrb[16].mxu0  ;;  %1413 = vmatprep.mubr.f32.mxu1 %v637_v32 }
 0x1a2   : > { %v642_v37 = vpop.f32.mrb[17].mxu0  ;;  %957 = vmatmul.mubr.f32.gmra.mrb[122].mxu0 %v444_v33  ;;  %1414 = vmatmul.mubr.f32.gmra.mrb[14].mxu1 %v635_v34  ;;  %v641_v40 = vadd.f32 %v640_v36, %v2805_v50 }
 0x1a3   : > { %v643_v38 = vadd.f32 %v642_v37, %v2801_v49  ;;  %962 = vmatprep.mubr.f32.mxu0 %v447_v35 }
 0x1a5   : > { %v646_v43 = vpop.f32.mrb[18].mxu0  ;;  %1419 = vmatprep.mubr.f32.mxu1 %v643_v38 }
 0x1a6   : > { %v648_v45 = vpop.f32.mrb[19].mxu0  ;;  %963 = vmatmul.mubr.f32.gmra.mrb[124].mxu0 %v446_v39  ;;  %1420 = vmatmul.mubr.f32.gmra.mrb[16].mxu1 %v641_v40  ;;  %v647_v51 = vadd.f32 %v646_v43, %v2805_v50 }
 0x1a7   : > { %v649_v47 = vadd.f32 %v648_v45, %v2801_v49  ;;  %968 = vmatprep.mubr.f32.mxu0 %v449_v42 }
 0x1a9   : > { %v652_v52 = vpop.f32.mrb[20].mxu0  ;;  %1425 = vmatprep.mubr.f32.mxu1 %v649_v47 }
 0x1aa   : > { %v654_v53 = vpop.f32.mrb[21].mxu0  ;;  %969 = vmatmul.mubr.f32.gmra.mrb[126].mxu0 %v448_v48  ;;  %1426 = vmatmul.mubr.f32.gmra.mrb[18].mxu1 %v647_v51  ;;  %v653_v55 = vadd.f32 %v652_v52, %v2805_v50 }
 0x1ab   : > { %v655_v54 = vadd.f32 %v654_v53, %v2801_v49 }
 0x1ad   : > { %v658_v56 = vpop.f32.mrb[22].mxu0  ;;  %1431 = vmatprep.mubr.f32.mxu1 %v655_v54 }
 0x1ae   : > { %v660_v57 = vpop.f32.mrb[23].mxu0  ;;  %1432 = vmatmul.mubr.f32.gmra.mrb[20].mxu1 %v653_v55  ;;  %v659_v59 = vadd.f32 %v658_v56, %v2805_v50 }
 0x1af   : > { %v661_v58 = vadd.f32 %v660_v57, %v2801_v49 }
 0x1b1   : > { %v664_v60 = vpop.f32.mrb[24].mxu0  ;;  %1437 = vmatprep.mubr.f32.mxu1 %v661_v58 }
 0x1b2   : > { %v666_v61 = vpop.f32.mrb[25].mxu0  ;;  %1438 = vmatmul.mubr.f32.gmra.mrb[22].mxu1 %v659_v59  ;;  %v665_v63 = vadd.f32 %v664_v60, %v2805_v50 }
 0x1b3   : > { %v667_v62 = vadd.f32 %v666_v61, %v2801_v49 }
 0x1b5   : > { %v670_v0 = vpop.f32.mrb[26].mxu0  ;;  %1443 = vmatprep.mubr.f32.mxu1 %v667_v62 }
 0x1b6   : > { %v672_v1 = vpop.f32.mrb[27].mxu0  ;;  %1444 = vmatmul.mubr.f32.gmra.mrb[24].mxu1 %v665_v63  ;;  %v671_v3 = vadd.f32 %v670_v0, %v2805_v50 }
 0x1b7   : > { %v673_v2 = vadd.f32 %v672_v1, %v2801_v49 }
 0x1b9   : > { %v676_v4 = vpop.f32.mrb[28].mxu0  ;;  %1449 = vmatprep.mubr.f32.mxu1 %v673_v2 }
 0x1ba   : > { %v678_v5 = vpop.f32.mrb[29].mxu0  ;;  %1450 = vmatmul.mubr.f32.gmra.mrb[26].mxu1 %v671_v3  ;;  %v677_v7 = vadd.f32 %v676_v4, %v2805_v50 }
 0x1bb   : > { %v679_v6 = vadd.f32 %v678_v5, %v2801_v49 }
 0x1bd   : > { %v682_v8 = vpop.f32.mrb[30].mxu0  ;;  %1455 = vmatprep.mubr.f32.mxu1 %v679_v6 }
 0x1be   : > { %v684_v9 = vpop.f32.mrb[31].mxu0  ;;  %1456 = vmatmul.mubr.f32.gmra.mrb[28].mxu1 %v677_v7  ;;  %v683_v11 = vadd.f32 %v682_v8, %v2805_v50 }
 0x1bf   : > { %v685_v10 = vadd.f32 %v684_v9, %v2801_v49 }
 0x1c1   : > { %v688_v12 = vpop.f32.mrb[32].mxu0  ;;  %1461 = vmatprep.mubr.f32.mxu1 %v685_v10 }
 0x1c2   : > { %v690_v13 = vpop.f32.mrb[33].mxu0  ;;  %1462 = vmatmul.mubr.f32.gmra.mrb[30].mxu1 %v683_v11  ;;  %v689_v15 = vadd.f32 %v688_v12, %v2805_v50 }
 0x1c3   : > { %v691_v14 = vadd.f32 %v690_v13, %v2801_v49 }
 0x1c5   : > { %v694_v16 = vpop.f32.mrb[34].mxu0  ;;  %1467 = vmatprep.mubr.f32.mxu1 %v691_v14 }
 0x1c6   : > { %v696_v17 = vpop.f32.mrb[35].mxu0  ;;  %1468 = vmatmul.mubr.f32.gmra.mrb[32].mxu1 %v689_v15  ;;  %v695_v19 = vadd.f32 %v694_v16, %v2805_v50 }
 0x1c7   : > { %v697_v18 = vadd.f32 %v696_v17, %v2801_v49 }
 0x1c9   : > { %v700_v20 = vpop.f32.mrb[36].mxu0  ;;  %1473 = vmatprep.mubr.f32.mxu1 %v697_v18 }
 0x1ca   : > { %v702_v21 = vpop.f32.mrb[37].mxu0  ;;  %1474 = vmatmul.mubr.f32.gmra.mrb[34].mxu1 %v695_v19  ;;  %v701_v23 = vadd.f32 %v700_v20, %v2805_v50 }
 0x1cb   : > { %v703_v22 = vadd.f32 %v702_v21, %v2801_v49 }
 0x1cd   : > { %v706_v24 = vpop.f32.mrb[38].mxu0  ;;  %1479 = vmatprep.mubr.f32.mxu1 %v703_v22 }
 0x1ce   : > { %v708_v25 = vpop.f32.mrb[39].mxu0  ;;  %1480 = vmatmul.mubr.f32.gmra.mrb[36].mxu1 %v701_v23  ;;  %v707_v27 = vadd.f32 %v706_v24, %v2805_v50 }
 0x1cf   : > { %v709_v26 = vadd.f32 %v708_v25, %v2801_v49 }
 0x1d1   : > { %v712_v28 = vpop.f32.mrb[40].mxu0  ;;  %1485 = vmatprep.mubr.f32.mxu1 %v709_v26 }
 0x1d2   : > { %v714_v29 = vpop.f32.mrb[41].mxu0  ;;  %1486 = vmatmul.mubr.f32.gmra.mrb[38].mxu1 %v707_v27  ;;  %v713_v31 = vadd.f32 %v712_v28, %v2805_v50 }
 0x1d3   : > { %v715_v30 = vadd.f32 %v714_v29, %v2801_v49 }
 0x1d5   : > { %v718_v32 = vpop.f32.mrb[42].mxu0  ;;  %1491 = vmatprep.mubr.f32.mxu1 %v715_v30 }
 0x1d6   : > { %v720_v33 = vpop.f32.mrb[43].mxu0  ;;  %1492 = vmatmul.mubr.f32.gmra.mrb[40].mxu1 %v713_v31  ;;  %v719_v35 = vadd.f32 %v718_v32, %v2805_v50 }
 0x1d7   : > { %v721_v34 = vadd.f32 %v720_v33, %v2801_v49 }
 0x1d9   : > { %v724_v36 = vpop.f32.mrb[44].mxu0  ;;  %1497 = vmatprep.mubr.f32.mxu1 %v721_v34 }
 0x1da   : > { %v726_v37 = vpop.f32.mrb[45].mxu0  ;;  %1498 = vmatmul.mubr.f32.gmra.mrb[42].mxu1 %v719_v35  ;;  %v725_v39 = vadd.f32 %v724_v36, %v2805_v50 }
 0x1db   : > { %v727_v38 = vadd.f32 %v726_v37, %v2801_v49 }
 0x1dd   : > { %v730_v40 = vpop.f32.mrb[46].mxu0  ;;  %1503 = vmatprep.mubr.f32.mxu1 %v727_v38 }
 0x1de   : > { %v732_v42 = vpop.f32.mrb[47].mxu0  ;;  %1504 = vmatmul.mubr.f32.gmra.mrb[44].mxu1 %v725_v39  ;;  %v731_v45 = vadd.f32 %v730_v40, %v2805_v50 }
 0x1df   : > { %v733_v43 = vadd.f32 %v732_v42, %v2801_v49 }
 0x1e1   : > { %v736_v47 = vpop.f32.mrb[48].mxu0  ;;  %1509 = vmatprep.mubr.f32.mxu1 %v733_v43 }
 0x1e2   : > { %v738_v48 = vpop.f32.mrb[49].mxu0  ;;  %1510 = vmatmul.mubr.f32.gmra.mrb[46].mxu1 %v731_v45  ;;  %v737_v52 = vadd.f32 %v736_v47, %v2805_v50 }
 0x1e3   : > { %v739_v51 = vadd.f32 %v738_v48, %v2801_v49 }
 0x1e5   : > { %v742_v53 = vpop.f32.mrb[50].mxu0  ;;  %1515 = vmatprep.mubr.f32.mxu1 %v739_v51 }
 0x1e6   : > { %v744_v54 = vpop.f32.mrb[51].mxu0  ;;  %1516 = vmatmul.mubr.f32.gmra.mrb[48].mxu1 %v737_v52  ;;  %v743_v56 = vadd.f32 %v742_v53, %v2805_v50 }
 0x1e7   : > { %v745_v55 = vadd.f32 %v744_v54, %v2801_v49 }
 0x1e9   : > { %v748_v57 = vpop.f32.mrb[52].mxu0  ;;  %1521 = vmatprep.mubr.f32.mxu1 %v745_v55 }
 0x1ea   : > { %v750_v58 = vpop.f32.mrb[53].mxu0  ;;  %1522 = vmatmul.mubr.f32.gmra.mrb[50].mxu1 %v743_v56  ;;  %v749_v60 = vadd.f32 %v748_v57, %v2805_v50 }
 0x1eb   : > { %v751_v59 = vadd.f32 %v750_v58, %v2801_v49 }
 0x1ed   : > { %v754_v61 = vpop.f32.mrb[54].mxu0  ;;  %1527 = vmatprep.mubr.f32.mxu1 %v751_v59 }
 0x1ee   : > { %v756_v62 = vpop.f32.mrb[55].mxu0  ;;  %1528 = vmatmul.mubr.f32.gmra.mrb[52].mxu1 %v749_v60  ;;  %v755_v0 = vadd.f32 %v754_v61, %v2805_v50 }
 0x1ef   : > { %v757_v63 = vadd.f32 %v756_v62, %v2801_v49 }
 0x1f1   : > { %v760_v1 = vpop.f32.mrb[56].mxu0  ;;  %1533 = vmatprep.mubr.f32.mxu1 %v757_v63 }
 0x1f2   : > { %v762_v2 = vpop.f32.mrb[57].mxu0  ;;  %1534 = vmatmul.mubr.f32.gmra.mrb[54].mxu1 %v755_v0  ;;  %v761_v4 = vadd.f32 %v760_v1, %v2805_v50 }
 0x1f3   : > { %v763_v3 = vadd.f32 %v762_v2, %v2801_v49 }
 0x1f5   : > { %v766_v5 = vpop.f32.mrb[58].mxu0  ;;  %1539 = vmatprep.mubr.f32.mxu1 %v763_v3 }
 0x1f6   : > { %v768_v6 = vpop.f32.mrb[59].mxu0  ;;  %1540 = vmatmul.mubr.f32.gmra.mrb[56].mxu1 %v761_v4  ;;  %v767_v8 = vadd.f32 %v766_v5, %v2805_v50 }
 0x1f7   : > { %v769_v7 = vadd.f32 %v768_v6, %v2801_v49 }
 0x1f9   : > { %v772_v9 = vpop.f32.mrb[60].mxu0  ;;  %1545 = vmatprep.mubr.f32.mxu1 %v769_v7 }
 0x1fa   : > { %v774_v10 = vpop.f32.mrb[61].mxu0  ;;  %1546 = vmatmul.mubr.f32.gmra.mrb[58].mxu1 %v767_v8  ;;  %v773_v12 = vadd.f32 %v772_v9, %v2805_v50 }
 0x1fb   : > { %v775_v11 = vadd.f32 %v774_v10, %v2801_v49 }
 0x1fd   : > { %v778_v13 = vpop.f32.mrb[62].mxu0  ;;  %1551 = vmatprep.mubr.f32.mxu1 %v775_v11 }
 0x1fe   : > { %v780_v14 = vpop.f32.mrb[63].mxu0  ;;  %1552 = vmatmul.mubr.f32.gmra.mrb[60].mxu1 %v773_v12  ;;  %v779_v16 = vadd.f32 %v778_v13, %v2805_v50 }
 0x1ff   : > { %v781_v15 = vadd.f32 %v780_v14, %v2801_v49 }
 0x201   : > { %v784_v17 = vpop.f32.mrb[64].mxu0  ;;  %1557 = vmatprep.mubr.f32.mxu1 %v781_v15 }
 0x202   : > { %v786_v18 = vpop.f32.mrb[65].mxu0  ;;  %1558 = vmatmul.mubr.f32.gmra.mrb[62].mxu1 %v779_v16  ;;  %v785_v20 = vadd.f32 %v784_v17, %v2805_v50 }
 0x203   : > { %v787_v19 = vadd.f32 %v786_v18, %v2801_v49 }
 0x205   : > { %v790_v21 = vpop.f32.mrb[66].mxu0  ;;  %1563 = vmatprep.mubr.f32.mxu1 %v787_v19 }
 0x206   : > { %v792_v22 = vpop.f32.mrb[67].mxu0  ;;  %1564 = vmatmul.mubr.f32.gmra.mrb[64].mxu1 %v785_v20  ;;  %v791_v24 = vadd.f32 %v790_v21, %v2805_v50 }
 0x207   : > { %v793_v23 = vadd.f32 %v792_v22, %v2801_v49 }
 0x209   : > { %v796_v25 = vpop.f32.mrb[68].mxu0  ;;  %1569 = vmatprep.mubr.f32.mxu1 %v793_v23 }
 0x20a   : > { %v798_v26 = vpop.f32.mrb[69].mxu0  ;;  %1570 = vmatmul.mubr.f32.gmra.mrb[66].mxu1 %v791_v24  ;;  %v797_v28 = vadd.f32 %v796_v25, %v2805_v50 }
 0x20b   : > { %v799_v27 = vadd.f32 %v798_v26, %v2801_v49 }
 0x20d   : > { %v802_v29 = vpop.f32.mrb[70].mxu0  ;;  %1575 = vmatprep.mubr.f32.mxu1 %v799_v27 }
 0x20e   : > { %v804_v30 = vpop.f32.mrb[71].mxu0  ;;  %1576 = vmatmul.mubr.f32.gmra.mrb[68].mxu1 %v797_v28  ;;  %v803_v32 = vadd.f32 %v802_v29, %v2805_v50 }
 0x20f   : > { %v805_v31 = vadd.f32 %v804_v30, %v2801_v49 }
 0x211   : > { %v808_v33 = vpop.f32.mrb[72].mxu0  ;;  %1581 = vmatprep.mubr.f32.mxu1 %v805_v31 }
 0x212   : > { %v810_v34 = vpop.f32.mrb[73].mxu0  ;;  %1582 = vmatmul.mubr.f32.gmra.mrb[70].mxu1 %v803_v32  ;;  %v809_v36 = vadd.f32 %v808_v33, %v2805_v50 }
 0x213   : > { %v811_v35 = vadd.f32 %v810_v34, %v2801_v49 }
 0x215   : > { %v814_v37 = vpop.f32.mrb[74].mxu0  ;;  %1587 = vmatprep.mubr.f32.mxu1 %v811_v35 }
 0x216   : > { %v816_v38 = vpop.f32.mrb[75].mxu0  ;;  %1588 = vmatmul.mubr.f32.gmra.mrb[72].mxu1 %v809_v36  ;;  %v815_v40 = vadd.f32 %v814_v37, %v2805_v50 }
 0x217   : > { %v817_v39 = vadd.f32 %v816_v38, %v2801_v49 }
 0x219   : > { %v820_v42 = vpop.f32.mrb[76].mxu0  ;;  %1593 = vmatprep.mubr.f32.mxu1 %v817_v39 }
 0x21a   : > { %v822_v43 = vpop.f32.mrb[77].mxu0  ;;  %1594 = vmatmul.mubr.f32.gmra.mrb[74].mxu1 %v815_v40  ;;  %v821_v47 = vadd.f32 %v820_v42, %v2805_v50  ;;  %v1295_v42 = vld [vmem:[%s3286_s4] sm:$0x3] }
 0x21b   : > { %v823_v45 = vadd.f32 %v822_v43, %v2801_v49 }
 0x21d   : > { %v826_v48 = vpop.f32.mrb[78].mxu0  ;;  %1599 = vmatprep.mubr.f32.mxu1 %v823_v45 }
 0x21e   : > { %v828_v51 = vpop.f32.mrb[79].mxu0  ;;  %1600 = vmatmul.mubr.f32.gmra.mrb[76].mxu1 %v821_v47  ;;  %v827_v53 = vadd.f32 %v826_v48, %v2805_v50  ;;  %v2938_v48 = vrot.slane %v1295_v42, %v518_v46 }
 0x21f   : > { %v829_v52 = vadd.f32 %v828_v51, %v2801_v49 }
 0x221   : > { %v832_v54 = vpop.f32.mrb[80].mxu0  ;;  %1605 = vmatprep.mubr.f32.mxu1 %v829_v52  ;;  %v2943_v52 = vrot.slane %v1295_v42, %v522_v44 }
 0x222   : > { %v834_v55 = vpop.f32.mrb[81].mxu0  ;;  %1606 = vmatmul.mubr.f32.gmra.mrb[78].mxu1 %v827_v53  ;;  %v833_v57 = vadd.f32 %v832_v54, %v2805_v50 }
 0x223   : > { %v835_v56 = vadd.f32 %v834_v55, %v2801_v49 }
 0x225   : > { %v838_v58 = vpop.f32.mrb[82].mxu0  ;;  %1611 = vmatprep.mubr.f32.mxu1 %v835_v56 }
 0x226   : > { %v840_v59 = vpop.f32.mrb[83].mxu0  ;;  %1612 = vmatmul.mubr.f32.gmra.mrb[80].mxu1 %v833_v57  ;;  %v839_v61 = vadd.f32 %v838_v58, %v2805_v50 }
 0x227   : > { %v841_v60 = vadd.f32 %v840_v59, %v2801_v49 }
 0x229   : > { %v844_v62 = vpop.f32.mrb[84].mxu0  ;;  %1617 = vmatprep.mubr.f32.mxu1 %v841_v60 }
 0x22a   : > { %v846_v63 = vpop.f32.mrb[85].mxu0  ;;  %1618 = vmatmul.mubr.f32.gmra.mrb[82].mxu1 %v839_v61  ;;  %v845_v1 = vadd.f32 %v844_v62, %v2805_v50 }
 0x22b   : > { %v847_v0 = vadd.f32 %v846_v63, %v2801_v49 }
 0x22d   : > { %v850_v2 = vpop.f32.mrb[86].mxu0  ;;  %1623 = vmatprep.mubr.f32.mxu1 %v847_v0 }
 0x22e   : > { %v852_v3 = vpop.f32.mrb[87].mxu0  ;;  %1624 = vmatmul.mubr.f32.gmra.mrb[84].mxu1 %v845_v1  ;;  %v851_v5 = vadd.f32 %v850_v2, %v2805_v50 }
 0x22f   : > { %v853_v4 = vadd.f32 %v852_v3, %v2801_v49 }
 0x231   : > { %v856_v6 = vpop.f32.mrb[88].mxu0  ;;  %1629 = vmatprep.mubr.f32.mxu1 %v853_v4 }
 0x232   : > { %v858_v7 = vpop.f32.mrb[89].mxu0  ;;  %1630 = vmatmul.mubr.f32.gmra.mrb[86].mxu1 %v851_v5  ;;  %v857_v9 = vadd.f32 %v856_v6, %v2805_v50 }
 0x233   : > { %v859_v8 = vadd.f32 %v858_v7, %v2801_v49 }
 0x235   : > { %v862_v10 = vpop.f32.mrb[90].mxu0  ;;  %1635 = vmatprep.mubr.f32.mxu1 %v859_v8 }
 0x236   : > { %v864_v11 = vpop.f32.mrb[91].mxu0  ;;  %1636 = vmatmul.mubr.f32.gmra.mrb[88].mxu1 %v857_v9  ;;  %v863_v13 = vadd.f32 %v862_v10, %v2805_v50 }
 0x237   : > { %v865_v12 = vadd.f32 %v864_v11, %v2801_v49 }
 0x239   : > { %v868_v14 = vpop.f32.mrb[92].mxu0  ;;  %1641 = vmatprep.mubr.f32.mxu1 %v865_v12 }
 0x23a   : > { %v870_v15 = vpop.f32.mrb[93].mxu0  ;;  %1642 = vmatmul.mubr.f32.gmra.mrb[90].mxu1 %v863_v13  ;;  %v869_v17 = vadd.f32 %v868_v14, %v2805_v50 }
 0x23b   : > { %v871_v16 = vadd.f32 %v870_v15, %v2801_v49 }
 0x23d   : > { %v874_v18 = vpop.f32.mrb[94].mxu0  ;;  %1647 = vmatprep.mubr.f32.mxu1 %v871_v16 }
 0x23e   : > { %v876_v19 = vpop.f32.mrb[95].mxu0  ;;  %1648 = vmatmul.mubr.f32.gmra.mrb[92].mxu1 %v869_v17  ;;  %v875_v21 = vadd.f32 %v874_v18, %v2805_v50 }
 0x23f   : > { %v877_v20 = vadd.f32 %v876_v19, %v2801_v49 }
 0x241   : > { %v880_v22 = vpop.f32.mrb[96].mxu0  ;;  %1653 = vmatprep.mubr.f32.mxu1 %v877_v20 }
 0x242   : > { %v882_v23 = vpop.f32.mrb[97].mxu0  ;;  %1654 = vmatmul.mubr.f32.gmra.mrb[94].mxu1 %v875_v21  ;;  %v881_v25 = vadd.f32 %v880_v22, %v2805_v50 }
 0x243   : > { %v883_v24 = vadd.f32 %v882_v23, %v2801_v49 }
 0x245   : > { %v886_v26 = vpop.f32.mrb[98].mxu0  ;;  %1659 = vmatprep.mubr.f32.mxu1 %v883_v24 }
 0x246   : > { %v888_v27 = vpop.f32.mrb[99].mxu0  ;;  %1660 = vmatmul.mubr.f32.gmra.mrb[96].mxu1 %v881_v25  ;;  %v887_v29 = vadd.f32 %v886_v26, %v2805_v50 }
 0x247   : > { %v889_v28 = vadd.f32 %v888_v27, %v2801_v49 }
 0x249   : > { %v892_v30 = vpop.f32.mrb[100].mxu0  ;;  %1665 = vmatprep.mubr.f32.mxu1 %v889_v28 }
 0x24a   : > { %v894_v31 = vpop.f32.mrb[101].mxu0  ;;  %1666 = vmatmul.mubr.f32.gmra.mrb[98].mxu1 %v887_v29  ;;  %v893_v33 = vadd.f32 %v892_v30, %v2805_v50 }
 0x24b   : > { %v895_v32 = vadd.f32 %v894_v31, %v2801_v49 }
 0x24d   : > { %v898_v34 = vpop.f32.mrb[102].mxu0  ;;  %1671 = vmatprep.mubr.f32.mxu1 %v895_v32 }
 0x24e   : > { %v900_v35 = vpop.f32.mrb[103].mxu0  ;;  %1672 = vmatmul.mubr.f32.gmra.mrb[100].mxu1 %v893_v33  ;;  %v899_v37 = vadd.f32 %v898_v34, %v2805_v50 }
 0x24f   : > { %v901_v36 = vadd.f32 %v900_v35, %v2801_v49 }
 0x251   : > { %v904_v38 = vpop.f32.mrb[104].mxu0  ;;  %1677 = vmatprep.mubr.f32.mxu1 %v901_v36 }
 0x252   : > { %v906_v39 = vpop.f32.mrb[105].mxu0  ;;  %1678 = vmatmul.mubr.f32.gmra.mrb[102].mxu1 %v899_v37  ;;  %v905_v43 = vadd.f32 %v904_v38, %v2805_v50 }
 0x253   : > { %v907_v40 = vadd.f32 %v906_v39, %v2801_v49 }
 0x255   : > { %v910_v45 = vpop.f32.mrb[106].mxu0  ;;  %1683 = vmatprep.mubr.f32.mxu1 %v907_v40 }
 0x256   : > { %v912_v47 = vpop.f32.mrb[107].mxu0  ;;  %1684 = vmatmul.mubr.f32.gmra.mrb[104].mxu1 %v905_v43  ;;  %v911_v53 = vadd.f32 %v910_v45, %v2805_v50 }
 0x257   : > { %v913_v51 = vadd.f32 %v912_v47, %v2801_v49 }
 0x259   : > { %v916_v54 = vpop.f32.mrb[108].mxu0  ;;  %v1373_v55 = vpop.f32.mrb[0].mxu1  ;;  %1689 = vmatprep.mubr.f32.mxu1 %v913_v51 }
 0x25a   : > { %v1374_v56 = vadd.f32 %v1373_v55, %v2938_v48  ;;  %v918_v57 = vpop.f32.mrb[109].mxu0  ;;  %v1375_v58 = vpop.f32.mrb[1].mxu1  ;;  %1690 = vmatmul.mubr.f32.gmra.mrb[106].mxu1 %v911_v53  ;;  %v917_v60 = vadd.f32 %v916_v54, %v2805_v50 }
 0x25b   : > { %v919_v59 = vadd.f32 %v918_v57, %v2801_v49  ;;  %v1376_v46 = vadd.f32 %v1375_v58, %v2943_v52 }
 0x25c   : > { %1756 = vst [vmem:[%s2952_s9] sm:$0xff] %v1374_v56 }
 0x25d   : > { %1757 = vst [vmem:[%s2952_s9 + $0x8] sm:$0xff] %v1376_v46  ;;  %v922_v41 = vpop.f32.mrb[110].mxu0  ;;  %v1379_v44 = vpop.f32.mrb[2].mxu1  ;;  %1695 = vmatprep.mubr.f32.mxu1 %v919_v59 }
 0x25e   : > { %v1380_v61 = vadd.f32 %v1379_v44, %v2938_v48  ;;  %v924_v62 = vpop.f32.mrb[111].mxu0  ;;  %v1381_v63 = vpop.f32.mrb[3].mxu1  ;;  %1696 = vmatmul.mubr.f32.gmra.mrb[108].mxu1 %v917_v60  ;;  %v923_v2 = vadd.f32 %v922_v41, %v2805_v50 }
 0x25f   : > { %v925_v0 = vadd.f32 %v924_v62, %v2801_v49  ;;  %v1382_v1 = vadd.f32 %v1381_v63, %v2943_v52 }
 0x260   : > { %1758 = vst [vmem:[%s2952_s9 + $0x10] sm:$0xff] %v1380_v61 }
 0x261   : > { %1759 = vst [vmem:[%s2952_s9 + $0x18] sm:$0xff] %v1382_v1  ;;  %v928_v3 = vpop.f32.mrb[112].mxu0  ;;  %v1385_v4 = vpop.f32.mrb[4].mxu1  ;;  %1701 = vmatprep.mubr.f32.mxu1 %v925_v0 }
 0x262   : > { %v1386_v5 = vadd.f32 %v1385_v4, %v2938_v48  ;;  %v930_v6 = vpop.f32.mrb[113].mxu0  ;;  %v1387_v7 = vpop.f32.mrb[5].mxu1  ;;  %1702 = vmatmul.mubr.f32.gmra.mrb[110].mxu1 %v923_v2  ;;  %v929_v10 = vadd.f32 %v928_v3, %v2805_v50 }
 0x263   : > { %v931_v8 = vadd.f32 %v930_v6, %v2801_v49  ;;  %v1388_v9 = vadd.f32 %v1387_v7, %v2943_v52 }
 0x264   : > { %1760 = vst [vmem:[%s2952_s9 + $0x20] sm:$0xff] %v1386_v5 }
 0x265   : > { %1761 = vst [vmem:[%s2952_s9 + $0x28] sm:$0xff] %v1388_v9  ;;  %v934_v11 = vpop.f32.mrb[114].mxu0  ;;  %v1391_v12 = vpop.f32.mrb[6].mxu1  ;;  %1707 = vmatprep.mubr.f32.mxu1 %v931_v8 }
 0x266   : > { %v1392_v13 = vadd.f32 %v1391_v12, %v2938_v48  ;;  %v936_v14 = vpop.f32.mrb[115].mxu0  ;;  %v1393_v15 = vpop.f32.mrb[7].mxu1  ;;  %1708 = vmatmul.mubr.f32.gmra.mrb[112].mxu1 %v929_v10  ;;  %v935_v18 = vadd.f32 %v934_v11, %v2805_v50 }
 0x267   : > { %v937_v16 = vadd.f32 %v936_v14, %v2801_v49  ;;  %v1394_v17 = vadd.f32 %v1393_v15, %v2943_v52 }
 0x268   : > { %1762 = vst [vmem:[%s2952_s9 + $0x30] sm:$0xff] %v1392_v13 }
 0x269   : > { %1763 = vst [vmem:[%s2952_s9 + $0x38] sm:$0xff] %v1394_v17  ;;  %v940_v19 = vpop.f32.mrb[116].mxu0  ;;  %v1397_v20 = vpop.f32.mrb[8].mxu1  ;;  %1713 = vmatprep.mubr.f32.mxu1 %v937_v16 }
 0x26a   : > { %v1398_v21 = vadd.f32 %v1397_v20, %v2938_v48  ;;  %v942_v22 = vpop.f32.mrb[117].mxu0  ;;  %v1399_v23 = vpop.f32.mrb[9].mxu1  ;;  %1714 = vmatmul.mubr.f32.gmra.mrb[114].mxu1 %v935_v18  ;;  %v941_v26 = vadd.f32 %v940_v19, %v2805_v50 }
 0x26b   : > { %v943_v24 = vadd.f32 %v942_v22, %v2801_v49  ;;  %v1400_v25 = vadd.f32 %v1399_v23, %v2943_v52 }
 0x26c   : > { %1764 = vst [vmem:[%s2952_s9 + $0x40] sm:$0xff] %v1398_v21 }
 0x26d   : > { %1765 = vst [vmem:[%s2952_s9 + $0x48] sm:$0xff] %v1400_v25  ;;  %v946_v27 = vpop.f32.mrb[118].mxu0  ;;  %v1403_v28 = vpop.f32.mrb[10].mxu1  ;;  %1719 = vmatprep.mubr.f32.mxu1 %v943_v24 }
 0x26e   : > { %v1404_v29 = vadd.f32 %v1403_v28, %v2938_v48  ;;  %v948_v30 = vpop.f32.mrb[119].mxu0  ;;  %v1405_v31 = vpop.f32.mrb[11].mxu1  ;;  %1720 = vmatmul.mubr.f32.gmra.mrb[116].mxu1 %v941_v26  ;;  %v947_v34 = vadd.f32 %v946_v27, %v2805_v50 }
 0x26f   : > { %v949_v32 = vadd.f32 %v948_v30, %v2801_v49  ;;  %v1406_v33 = vadd.f32 %v1405_v31, %v2943_v52 }
 0x270   : > { %1766 = vst [vmem:[%s2952_s9 + $0x50] sm:$0xff] %v1404_v29 }
 0x271   : > { %1767 = vst [vmem:[%s2952_s9 + $0x58] sm:$0xff] %v1406_v33  ;;  %v952_v35 = vpop.f32.mrb[120].mxu0  ;;  %v1409_v36 = vpop.f32.mrb[12].mxu1  ;;  %1725 = vmatprep.mubr.f32.mxu1 %v949_v32 }
 0x272   : > { %v1410_v37 = vadd.f32 %v1409_v36, %v2938_v48  ;;  %v954_v38 = vpop.f32.mrb[121].mxu0  ;;  %v1411_v39 = vpop.f32.mrb[13].mxu1  ;;  %1726 = vmatmul.mubr.f32.gmra.mrb[118].mxu1 %v947_v34  ;;  %v953_v43 = vadd.f32 %v952_v35, %v2805_v50 }
 0x273   : > { %v955_v40 = vadd.f32 %v954_v38, %v2801_v49  ;;  %v1412_v42 = vadd.f32 %v1411_v39, %v2943_v52 }
 0x274   : > { %1768 = vst [vmem:[%s2952_s9 + $0x60] sm:$0xff] %v1410_v37 }
 0x275   : > { %1769 = vst [vmem:[%s2952_s9 + $0x68] sm:$0xff] %v1412_v42  ;;  %v958_v45 = vpop.f32.mrb[122].mxu0  ;;  %v1415_v47 = vpop.f32.mrb[14].mxu1  ;;  %1731 = vmatprep.mubr.f32.mxu1 %v955_v40 }
 0x276   : > { %v1416_v51 = vadd.f32 %v1415_v47, %v2938_v48  ;;  %v960_v53 = vpop.f32.mrb[123].mxu0  ;;  %v1417_v54 = vpop.f32.mrb[15].mxu1  ;;  %1732 = vmatmul.mubr.f32.gmra.mrb[120].mxu1 %v953_v43  ;;  %v959_v57 = vadd.f32 %v958_v45, %v2805_v50 }
 0x277   : > { %v961_v55 = vadd.f32 %v960_v53, %v2801_v49  ;;  %v1418_v56 = vadd.f32 %v1417_v54, %v2943_v52 }
 0x278   : > { %1770 = vst [vmem:[%s2952_s9 + $0x70] sm:$0xff] %v1416_v51 }
 0x279   : > { %1771 = vst [vmem:[%s2952_s9 + $0x78] sm:$0xff] %v1418_v56  ;;  %v964_v58 = vpop.f32.mrb[124].mxu0  ;;  %v1421_v59 = vpop.f32.mrb[16].mxu1  ;;  %1737 = vmatprep.mubr.f32.mxu1 %v961_v55 }
 0x27a   : > { %v1422_v46 = vadd.f32 %v1421_v59, %v2938_v48  ;;  %v966_v60 = vpop.f32.mrb[125].mxu0  ;;  %v1423_v41 = vpop.f32.mrb[17].mxu1  ;;  %1738 = vmatmul.mubr.f32.gmra.mrb[122].mxu1 %v959_v57  ;;  %v965_v62 = vadd.f32 %v964_v58, %v2805_v50 }
 0x27b   : > { %v967_v44 = vadd.f32 %v966_v60, %v2801_v49  ;;  %v1424_v61 = vadd.f32 %v1423_v41, %v2943_v52 }
 0x27c   : > { %1772 = vst [vmem:[%s2952_s9 + $0x80] sm:$0xff] %v1422_v46 }
 0x27d   : > { %1773 = vst [vmem:[%s2952_s9 + $0x88] sm:$0xff] %v1424_v61  ;;  %v970_v63 = vpop.f32.mrb[126].mxu0  ;;  %v1427_v0 = vpop.f32.mrb[18].mxu1  ;;  %1743 = vmatprep.mubr.f32.mxu1 %v967_v44 }
 0x27e   : > { %v1428_v1 = vadd.f32 %v1427_v0, %v2938_v48  ;;  %v972_v2 = vpop.f32.mrb[127].mxu0  ;;  %v1429_v3 = vpop.f32.mrb[19].mxu1  ;;  %1744 = vmatmul.mubr.f32.gmra.mrb[124].mxu1 %v965_v62  ;;  %v971_v6 = vadd.f32 %v970_v63, %v2805_v50 }
 0x27f   : > { %v973_v4 = vadd.f32 %v972_v2, %v2801_v49  ;;  %v1430_v5 = vadd.f32 %v1429_v3, %v2943_v52 }
 0x280   : > { %1774 = vst [vmem:[%s2952_s9 + $0x90] sm:$0xff] %v1428_v1 }
 0x281   : > { %1775 = vst [vmem:[%s2952_s9 + $0x98] sm:$0xff] %v1430_v5  ;;  %v1433_v7 = vpop.f32.mrb[20].mxu1  ;;  %1749 = vmatprep.mubr.f32.mxu1 %v973_v4 }
 0x282   : > { %v1434_v8 = vadd.f32 %v1433_v7, %v2938_v48  ;;  %v1435_v9 = vpop.f32.mrb[21].mxu1  ;;  %1750 = vmatmul.mubr.f32.gmra.mrb[126].mxu1 %v971_v6 }
 0x283   : > { %v1436_v10 = vadd.f32 %v1435_v9, %v2943_v52 }
 0x284   : > { %1776 = vst [vmem:[%s2952_s9 + $0xa0] sm:$0xff] %v1434_v8 }
 0x285   : > { %1777 = vst [vmem:[%s2952_s9 + $0xa8] sm:$0xff] %v1436_v10  ;;  %v1439_v49 = vpop.f32.mrb[22].mxu1 }
 0x286   : > { %v1440_v11 = vadd.f32 %v1439_v49, %v2938_v48  ;;  %v1441_v50 = vpop.f32.mrb[23].mxu1 }
 0x287   : > { %v1442_v12 = vadd.f32 %v1441_v50, %v2943_v52 }
 0x288   : > { %1778 = vst [vmem:[%s2952_s9 + $0xb0] sm:$0xff] %v1440_v11 }
 0x289   : > { %1779 = vst [vmem:[%s2952_s9 + $0xb8] sm:$0xff] %v1442_v12  ;;  %v1445_v13 = vpop.f32.mrb[24].mxu1 }
 0x28a   : > { %v1446_v14 = vadd.f32 %v1445_v13, %v2938_v48  ;;  %v1447_v15 = vpop.f32.mrb[25].mxu1 }
 0x28b   : > { %v1448_v16 = vadd.f32 %v1447_v15, %v2943_v52 }
 0x28c   : > { %1780 = vst [vmem:[%s2952_s9 + $0xc0] sm:$0xff] %v1446_v14 }
 0x28d   : > { %1781 = vst [vmem:[%s2952_s9 + $0xc8] sm:$0xff] %v1448_v16  ;;  %v1451_v17 = vpop.f32.mrb[26].mxu1 }
 0x28e   : > { %v1452_v18 = vadd.f32 %v1451_v17, %v2938_v48  ;;  %v1453_v19 = vpop.f32.mrb[27].mxu1 }
 0x28f   : > { %v1454_v20 = vadd.f32 %v1453_v19, %v2943_v52 }
 0x290   : > { %1782 = vst [vmem:[%s2952_s9 + $0xd0] sm:$0xff] %v1452_v18 }
 0x291   : > { %1783 = vst [vmem:[%s2952_s9 + $0xd8] sm:$0xff] %v1454_v20  ;;  %v1457_v21 = vpop.f32.mrb[28].mxu1 }
 0x292   : > { %v1458_v22 = vadd.f32 %v1457_v21, %v2938_v48  ;;  %v1459_v23 = vpop.f32.mrb[29].mxu1 }
 0x293   : > { %v1460_v24 = vadd.f32 %v1459_v23, %v2943_v52 }
 0x294   : > { %1784 = vst [vmem:[%s2952_s9 + $0xe0] sm:$0xff] %v1458_v22 }
 0x295   : > { %1785 = vst [vmem:[%s2952_s9 + $0xe8] sm:$0xff] %v1460_v24  ;;  %v1463_v25 = vpop.f32.mrb[30].mxu1 }
 0x296   : > { %v1464_v26 = vadd.f32 %v1463_v25, %v2938_v48  ;;  %v1465_v27 = vpop.f32.mrb[31].mxu1 }
 0x297   : > { %v1466_v28 = vadd.f32 %v1465_v27, %v2943_v52 }
 0x298   : > { %1786 = vst [vmem:[%s2952_s9 + $0xf0] sm:$0xff] %v1464_v26 }
 0x299   : > { %1787 = vst [vmem:[%s2952_s9 + $0xf8] sm:$0xff] %v1466_v28  ;;  %v1469_v29 = vpop.f32.mrb[32].mxu1 }
 0x29a   : > { %v1470_v30 = vadd.f32 %v1469_v29, %v2938_v48  ;;  %v1471_v31 = vpop.f32.mrb[33].mxu1 }
 0x29b   : > { %v1472_v32 = vadd.f32 %v1471_v31, %v2943_v52 }
 0x29c   : > { %1788 = vst [vmem:[%s2952_s9 + $0x100] sm:$0xff] %v1470_v30 }
 0x29d   : > { %1789 = vst [vmem:[%s2952_s9 + $0x108] sm:$0xff] %v1472_v32  ;;  %v1475_v33 = vpop.f32.mrb[34].mxu1 }
 0x29e   : > { %v1476_v34 = vadd.f32 %v1475_v33, %v2938_v48  ;;  %v1477_v35 = vpop.f32.mrb[35].mxu1 }
 0x29f   : > { %v1478_v36 = vadd.f32 %v1477_v35, %v2943_v52 }
 0x2a0   : > { %1790 = vst [vmem:[%s2952_s9 + $0x110] sm:$0xff] %v1476_v34 }
 0x2a1   : > { %1791 = vst [vmem:[%s2952_s9 + $0x118] sm:$0xff] %v1478_v36  ;;  %v1481_v37 = vpop.f32.mrb[36].mxu1 }
 0x2a2   : > { %v1482_v38 = vadd.f32 %v1481_v37, %v2938_v48  ;;  %v1483_v39 = vpop.f32.mrb[37].mxu1 }
 0x2a3   : > { %v1484_v40 = vadd.f32 %v1483_v39, %v2943_v52 }
 0x2a4   : > { %1792 = vst [vmem:[%s2952_s9 + $0x120] sm:$0xff] %v1482_v38 }
 0x2a5   : > { %1793 = vst [vmem:[%s2952_s9 + $0x128] sm:$0xff] %v1484_v40  ;;  %v1487_v42 = vpop.f32.mrb[38].mxu1 }
 0x2a6   : > { %v1488_v43 = vadd.f32 %v1487_v42, %v2938_v48  ;;  %v1489_v45 = vpop.f32.mrb[39].mxu1 }
 0x2a7   : > { %v1490_v47 = vadd.f32 %v1489_v45, %v2943_v52 }
 0x2a8   : > { %1794 = vst [vmem:[%s2952_s9 + $0x130] sm:$0xff] %v1488_v43 }
 0x2a9   : > { %1795 = vst [vmem:[%s2952_s9 + $0x138] sm:$0xff] %v1490_v47  ;;  %v1493_v51 = vpop.f32.mrb[40].mxu1 }
 0x2aa   : > { %v1494_v53 = vadd.f32 %v1493_v51, %v2938_v48  ;;  %v1495_v54 = vpop.f32.mrb[41].mxu1 }
 0x2ab   : > { %v1496_v55 = vadd.f32 %v1495_v54, %v2943_v52 }
 0x2ac   : > { %1796 = vst [vmem:[%s2952_s9 + $0x140] sm:$0xff] %v1494_v53 }
 0x2ad   : > { %1797 = vst [vmem:[%s2952_s9 + $0x148] sm:$0xff] %v1496_v55  ;;  %v1499_v56 = vpop.f32.mrb[42].mxu1 }
 0x2ae   : > { %v1500_v57 = vadd.f32 %v1499_v56, %v2938_v48  ;;  %v1501_v58 = vpop.f32.mrb[43].mxu1 }
 0x2af   : > { %v1502_v59 = vadd.f32 %v1501_v58, %v2943_v52 }
 0x2b0   : > { %1798 = vst [vmem:[%s2952_s9 + $0x150] sm:$0xff] %v1500_v57 }
 0x2b1   : > { %1799 = vst [vmem:[%s2952_s9 + $0x158] sm:$0xff] %v1502_v59  ;;  %v1505_v46 = vpop.f32.mrb[44].mxu1 }
 0x2b2   : > { %v1506_v60 = vadd.f32 %v1505_v46, %v2938_v48  ;;  %v1507_v41 = vpop.f32.mrb[45].mxu1 }
 0x2b3   : > { %v1508_v44 = vadd.f32 %v1507_v41, %v2943_v52 }
 0x2b4   : > { %1800 = vst [vmem:[%s2952_s9 + $0x160] sm:$0xff] %v1506_v60 }
 0x2b5   : > { %1801 = vst [vmem:[%s2952_s9 + $0x168] sm:$0xff] %v1508_v44  ;;  %v1511_v61 = vpop.f32.mrb[46].mxu1 }
 0x2b6   : > { %v1512_v62 = vadd.f32 %v1511_v61, %v2938_v48  ;;  %v1513_v63 = vpop.f32.mrb[47].mxu1 }
 0x2b7   : > { %v1514_v0 = vadd.f32 %v1513_v63, %v2943_v52 }
 0x2b8   : > { %1802 = vst [vmem:[%s2952_s9 + $0x170] sm:$0xff] %v1512_v62 }
 0x2b9   : > { %1803 = vst [vmem:[%s2952_s9 + $0x178] sm:$0xff] %v1514_v0  ;;  %v1517_v1 = vpop.f32.mrb[48].mxu1 }
 0x2ba   : > { %v1518_v2 = vadd.f32 %v1517_v1, %v2938_v48  ;;  %v1519_v3 = vpop.f32.mrb[49].mxu1 }
 0x2bb   : > { %v1520_v4 = vadd.f32 %v1519_v3, %v2943_v52 }
 0x2bc   : > { %1804 = vst [vmem:[%s2952_s9 + $0x180] sm:$0xff] %v1518_v2 }
 0x2bd   : > { %1805 = vst [vmem:[%s2952_s9 + $0x188] sm:$0xff] %v1520_v4  ;;  %v1523_v5 = vpop.f32.mrb[50].mxu1 }
 0x2be   : > { %v1524_v6 = vadd.f32 %v1523_v5, %v2938_v48  ;;  %v1525_v7 = vpop.f32.mrb[51].mxu1 }
 0x2bf   : > { %v1526_v8 = vadd.f32 %v1525_v7, %v2943_v52 }
 0x2c0   : > { %1806 = vst [vmem:[%s2952_s9 + $0x190] sm:$0xff] %v1524_v6 }
 0x2c1   : > { %1807 = vst [vmem:[%s2952_s9 + $0x198] sm:$0xff] %v1526_v8  ;;  %v1529_v9 = vpop.f32.mrb[52].mxu1 }
 0x2c2   : > { %v1530_v10 = vadd.f32 %v1529_v9, %v2938_v48  ;;  %v1531_v49 = vpop.f32.mrb[53].mxu1 }
 0x2c3   : > { %v1532_v11 = vadd.f32 %v1531_v49, %v2943_v52 }
 0x2c4   : > { %1808 = vst [vmem:[%s2952_s9 + $0x1a0] sm:$0xff] %v1530_v10 }
 0x2c5   : > { %1809 = vst [vmem:[%s2952_s9 + $0x1a8] sm:$0xff] %v1532_v11  ;;  %v1535_v50 = vpop.f32.mrb[54].mxu1 }
 0x2c6   : > { %v1536_v12 = vadd.f32 %v1535_v50, %v2938_v48  ;;  %v1537_v13 = vpop.f32.mrb[55].mxu1 }
 0x2c7   : > { %v1538_v14 = vadd.f32 %v1537_v13, %v2943_v52 }
 0x2c8   : > { %1810 = vst [vmem:[%s2952_s9 + $0x1b0] sm:$0xff] %v1536_v12 }
 0x2c9   : > { %1811 = vst [vmem:[%s2952_s9 + $0x1b8] sm:$0xff] %v1538_v14  ;;  %v1541_v15 = vpop.f32.mrb[56].mxu1 }
 0x2ca   : > { %v1542_v16 = vadd.f32 %v1541_v15, %v2938_v48  ;;  %v1543_v17 = vpop.f32.mrb[57].mxu1 }
 0x2cb   : > { %v1544_v18 = vadd.f32 %v1543_v17, %v2943_v52 }
 0x2cc   : > { %1812 = vst [vmem:[%s2952_s9 + $0x1c0] sm:$0xff] %v1542_v16 }
 0x2cd   : > { %1813 = vst [vmem:[%s2952_s9 + $0x1c8] sm:$0xff] %v1544_v18  ;;  %v1547_v19 = vpop.f32.mrb[58].mxu1 }
 0x2ce   : > { %v1548_v20 = vadd.f32 %v1547_v19, %v2938_v48  ;;  %v1549_v21 = vpop.f32.mrb[59].mxu1 }
 0x2cf   : > { %v1550_v22 = vadd.f32 %v1549_v21, %v2943_v52 }
 0x2d0   : > { %1814 = vst [vmem:[%s2952_s9 + $0x1d0] sm:$0xff] %v1548_v20 }
 0x2d1   : > { %1815 = vst [vmem:[%s2952_s9 + $0x1d8] sm:$0xff] %v1550_v22  ;;  %v1553_v23 = vpop.f32.mrb[60].mxu1 }
 0x2d2   : > { %v1554_v24 = vadd.f32 %v1553_v23, %v2938_v48  ;;  %v1555_v25 = vpop.f32.mrb[61].mxu1 }
 0x2d3   : > { %v1556_v26 = vadd.f32 %v1555_v25, %v2943_v52 }
 0x2d4   : > { %1816 = vst [vmem:[%s2952_s9 + $0x1e0] sm:$0xff] %v1554_v24 }
 0x2d5   : > { %1817 = vst [vmem:[%s2952_s9 + $0x1e8] sm:$0xff] %v1556_v26  ;;  %v1559_v27 = vpop.f32.mrb[62].mxu1 }
 0x2d6   : > { %v1560_v28 = vadd.f32 %v1559_v27, %v2938_v48  ;;  %v1561_v29 = vpop.f32.mrb[63].mxu1 }
 0x2d7   : > { %v1562_v30 = vadd.f32 %v1561_v29, %v2943_v52 }
 0x2d8   : > { %1818 = vst [vmem:[%s2952_s9 + $0x1f0] sm:$0xff] %v1560_v28 }
 0x2d9   : > { %1819 = vst [vmem:[%s2952_s9 + $0x1f8] sm:$0xff] %v1562_v30  ;;  %v1565_v31 = vpop.f32.mrb[64].mxu1 }
 0x2da   : > { %v1566_v32 = vadd.f32 %v1565_v31, %v2938_v48  ;;  %v1567_v33 = vpop.f32.mrb[65].mxu1 }
 0x2db   : > { %v1568_v34 = vadd.f32 %v1567_v33, %v2943_v52 }
 0x2dc   : > { %1820 = vst [vmem:[%s2952_s9 + $0x200] sm:$0xff] %v1566_v32 }
 0x2dd   : > { %1821 = vst [vmem:[%s2952_s9 + $0x208] sm:$0xff] %v1568_v34  ;;  %v1571_v35 = vpop.f32.mrb[66].mxu1 }
 0x2de   : > { %v1572_v36 = vadd.f32 %v1571_v35, %v2938_v48  ;;  %v1573_v37 = vpop.f32.mrb[67].mxu1 }
 0x2df   : > { %v1574_v38 = vadd.f32 %v1573_v37, %v2943_v52 }
 0x2e0   : > { %1822 = vst [vmem:[%s2952_s9 + $0x210] sm:$0xff] %v1572_v36 }
 0x2e1   : > { %1823 = vst [vmem:[%s2952_s9 + $0x218] sm:$0xff] %v1574_v38  ;;  %v1577_v39 = vpop.f32.mrb[68].mxu1 }
 0x2e2   : > { %v1578_v40 = vadd.f32 %v1577_v39, %v2938_v48  ;;  %v1579_v42 = vpop.f32.mrb[69].mxu1 }
 0x2e3   : > { %v1580_v43 = vadd.f32 %v1579_v42, %v2943_v52 }
 0x2e4   : > { %1824 = vst [vmem:[%s2952_s9 + $0x220] sm:$0xff] %v1578_v40 }
 0x2e5   : > { %1825 = vst [vmem:[%s2952_s9 + $0x228] sm:$0xff] %v1580_v43  ;;  %v1583_v45 = vpop.f32.mrb[70].mxu1 }
 0x2e6   : > { %v1584_v47 = vadd.f32 %v1583_v45, %v2938_v48  ;;  %v1585_v51 = vpop.f32.mrb[71].mxu1 }
 0x2e7   : > { %v1586_v53 = vadd.f32 %v1585_v51, %v2943_v52 }
 0x2e8   : > { %1826 = vst [vmem:[%s2952_s9 + $0x230] sm:$0xff] %v1584_v47 }
 0x2e9   : > { %1827 = vst [vmem:[%s2952_s9 + $0x238] sm:$0xff] %v1586_v53  ;;  %v1589_v54 = vpop.f32.mrb[72].mxu1 }
 0x2ea   : > { %v1590_v55 = vadd.f32 %v1589_v54, %v2938_v48  ;;  %v1591_v56 = vpop.f32.mrb[73].mxu1 }
 0x2eb   : > { %v1592_v57 = vadd.f32 %v1591_v56, %v2943_v52 }
 0x2ec   : > { %1828 = vst [vmem:[%s2952_s9 + $0x240] sm:$0xff] %v1590_v55 }
 0x2ed   : > { %1829 = vst [vmem:[%s2952_s9 + $0x248] sm:$0xff] %v1592_v57  ;;  %v1595_v58 = vpop.f32.mrb[74].mxu1 }
 0x2ee   : > { %v1596_v59 = vadd.f32 %v1595_v58, %v2938_v48  ;;  %v1597_v46 = vpop.f32.mrb[75].mxu1 }
 0x2ef   : > { %v1598_v60 = vadd.f32 %v1597_v46, %v2943_v52 }
 0x2f0   : > { %1830 = vst [vmem:[%s2952_s9 + $0x250] sm:$0xff] %v1596_v59 }
 0x2f1   : > { %1831 = vst [vmem:[%s2952_s9 + $0x258] sm:$0xff] %v1598_v60  ;;  %v1601_v41 = vpop.f32.mrb[76].mxu1 }
 0x2f2   : > { %v1602_v44 = vadd.f32 %v1601_v41, %v2938_v48  ;;  %v1603_v61 = vpop.f32.mrb[77].mxu1 }
 0x2f3   : > { %v1604_v62 = vadd.f32 %v1603_v61, %v2943_v52 }
 0x2f4   : > { %1832 = vst [vmem:[%s2952_s9 + $0x260] sm:$0xff] %v1602_v44 }
 0x2f5   : > { %1833 = vst [vmem:[%s2952_s9 + $0x268] sm:$0xff] %v1604_v62  ;;  %v1607_v63 = vpop.f32.mrb[78].mxu1 }
 0x2f6   : > { %v1608_v0 = vadd.f32 %v1607_v63, %v2938_v48  ;;  %v1609_v1 = vpop.f32.mrb[79].mxu1 }
 0x2f7   : > { %v1610_v2 = vadd.f32 %v1609_v1, %v2943_v52 }
 0x2f8   : > { %1834 = vst [vmem:[%s2952_s9 + $0x270] sm:$0xff] %v1608_v0 }
 0x2f9   : > { %1835 = vst [vmem:[%s2952_s9 + $0x278] sm:$0xff] %v1610_v2  ;;  %v1613_v3 = vpop.f32.mrb[80].mxu1 }
 0x2fa   : > { %v1614_v4 = vadd.f32 %v1613_v3, %v2938_v48  ;;  %v1615_v5 = vpop.f32.mrb[81].mxu1 }
 0x2fb   : > { %v1616_v6 = vadd.f32 %v1615_v5, %v2943_v52 }
 0x2fc   : > { %1836 = vst [vmem:[%s2952_s9 + $0x280] sm:$0xff] %v1614_v4 }
 0x2fd   : > { %1837 = vst [vmem:[%s2952_s9 + $0x288] sm:$0xff] %v1616_v6  ;;  %v1619_v7 = vpop.f32.mrb[82].mxu1 }
 0x2fe   : > { %v1620_v8 = vadd.f32 %v1619_v7, %v2938_v48  ;;  %v1621_v9 = vpop.f32.mrb[83].mxu1 }
 0x2ff   : > { %v1622_v10 = vadd.f32 %v1621_v9, %v2943_v52 }
 0x300   : > { %1838 = vst [vmem:[%s2952_s9 + $0x290] sm:$0xff] %v1620_v8 }
 0x301   : > { %1839 = vst [vmem:[%s2952_s9 + $0x298] sm:$0xff] %v1622_v10  ;;  %v1625_v49 = vpop.f32.mrb[84].mxu1 }
 0x302   : > { %v1626_v11 = vadd.f32 %v1625_v49, %v2938_v48  ;;  %v1627_v50 = vpop.f32.mrb[85].mxu1 }
 0x303   : > { %v1628_v12 = vadd.f32 %v1627_v50, %v2943_v52 }
 0x304   : > { %1840 = vst [vmem:[%s2952_s9 + $0x2a0] sm:$0xff] %v1626_v11 }
 0x305   : > { %1841 = vst [vmem:[%s2952_s9 + $0x2a8] sm:$0xff] %v1628_v12  ;;  %v1631_v13 = vpop.f32.mrb[86].mxu1 }
 0x306   : > { %v1632_v14 = vadd.f32 %v1631_v13, %v2938_v48  ;;  %v1633_v15 = vpop.f32.mrb[87].mxu1 }
 0x307   : > { %v1634_v16 = vadd.f32 %v1633_v15, %v2943_v52 }
 0x308   : > { %1842 = vst [vmem:[%s2952_s9 + $0x2b0] sm:$0xff] %v1632_v14 }
 0x309   : > { %1843 = vst [vmem:[%s2952_s9 + $0x2b8] sm:$0xff] %v1634_v16  ;;  %v1637_v17 = vpop.f32.mrb[88].mxu1 }
 0x30a   : > { %v1638_v18 = vadd.f32 %v1637_v17, %v2938_v48  ;;  %v1639_v19 = vpop.f32.mrb[89].mxu1 }
 0x30b   : > { %v1640_v20 = vadd.f32 %v1639_v19, %v2943_v52 }
 0x30c   : > { %1844 = vst [vmem:[%s2952_s9 + $0x2c0] sm:$0xff] %v1638_v18 }
 0x30d   : > { %1845 = vst [vmem:[%s2952_s9 + $0x2c8] sm:$0xff] %v1640_v20  ;;  %v1643_v21 = vpop.f32.mrb[90].mxu1 }
 0x30e   : > { %v1644_v22 = vadd.f32 %v1643_v21, %v2938_v48  ;;  %v1645_v23 = vpop.f32.mrb[91].mxu1 }
 0x30f   : > { %v1646_v24 = vadd.f32 %v1645_v23, %v2943_v52 }
 0x310   : > { %1846 = vst [vmem:[%s2952_s9 + $0x2d0] sm:$0xff] %v1644_v22 }
 0x311   : > { %1847 = vst [vmem:[%s2952_s9 + $0x2d8] sm:$0xff] %v1646_v24  ;;  %v1649_v25 = vpop.f32.mrb[92].mxu1 }
 0x312   : > { %v1650_v26 = vadd.f32 %v1649_v25, %v2938_v48  ;;  %v1651_v27 = vpop.f32.mrb[93].mxu1 }
 0x313   : > { %v1652_v28 = vadd.f32 %v1651_v27, %v2943_v52 }
 0x314   : > { %1848 = vst [vmem:[%s2952_s9 + $0x2e0] sm:$0xff] %v1650_v26 }
 0x315   : > { %1849 = vst [vmem:[%s2952_s9 + $0x2e8] sm:$0xff] %v1652_v28  ;;  %v1655_v29 = vpop.f32.mrb[94].mxu1 }
 0x316   : > { %v1656_v30 = vadd.f32 %v1655_v29, %v2938_v48  ;;  %v1657_v31 = vpop.f32.mrb[95].mxu1 }
 0x317   : > { %v1658_v32 = vadd.f32 %v1657_v31, %v2943_v52 }
 0x318   : > { %1850 = vst [vmem:[%s2952_s9 + $0x2f0] sm:$0xff] %v1656_v30 }
 0x319   : > { %1851 = vst [vmem:[%s2952_s9 + $0x2f8] sm:$0xff] %v1658_v32  ;;  %v1661_v33 = vpop.f32.mrb[96].mxu1 }
 0x31a   : > { %v1662_v34 = vadd.f32 %v1661_v33, %v2938_v48  ;;  %v1663_v35 = vpop.f32.mrb[97].mxu1 }
 0x31b   : > { %v1664_v36 = vadd.f32 %v1663_v35, %v2943_v52 }
 0x31c   : > { %1852 = vst [vmem:[%s2952_s9 + $0x300] sm:$0xff] %v1662_v34 }
 0x31d   : > { %1853 = vst [vmem:[%s2952_s9 + $0x308] sm:$0xff] %v1664_v36  ;;  %v1667_v37 = vpop.f32.mrb[98].mxu1 }
 0x31e   : > { %v1668_v38 = vadd.f32 %v1667_v37, %v2938_v48  ;;  %v1669_v39 = vpop.f32.mrb[99].mxu1 }
 0x31f   : > { %v1670_v40 = vadd.f32 %v1669_v39, %v2943_v52 }
 0x320   : > { %1854 = vst [vmem:[%s2952_s9 + $0x310] sm:$0xff] %v1668_v38 }
 0x321   : > { %1855 = vst [vmem:[%s2952_s9 + $0x318] sm:$0xff] %v1670_v40  ;;  %v1673_v42 = vpop.f32.mrb[100].mxu1 }
 0x322   : > { %v1674_v43 = vadd.f32 %v1673_v42, %v2938_v48  ;;  %v1675_v45 = vpop.f32.mrb[101].mxu1 }
 0x323   : > { %v1676_v47 = vadd.f32 %v1675_v45, %v2943_v52 }
 0x324   : > { %1856 = vst [vmem:[%s2952_s9 + $0x320] sm:$0xff] %v1674_v43 }
 0x325   : > { %1857 = vst [vmem:[%s2952_s9 + $0x328] sm:$0xff] %v1676_v47  ;;  %v1679_v51 = vpop.f32.mrb[102].mxu1 }
 0x326   : > { %v1680_v53 = vadd.f32 %v1679_v51, %v2938_v48  ;;  %v1681_v54 = vpop.f32.mrb[103].mxu1 }
 0x327   : > { %v1682_v55 = vadd.f32 %v1681_v54, %v2943_v52 }
 0x328   : > { %1858 = vst [vmem:[%s2952_s9 + $0x330] sm:$0xff] %v1680_v53 }
 0x329   : > { %1859 = vst [vmem:[%s2952_s9 + $0x338] sm:$0xff] %v1682_v55  ;;  %v1685_v56 = vpop.f32.mrb[104].mxu1 }
 0x32a   : > { %v1686_v57 = vadd.f32 %v1685_v56, %v2938_v48  ;;  %v1687_v58 = vpop.f32.mrb[105].mxu1 }
 0x32b   : > { %v1688_v59 = vadd.f32 %v1687_v58, %v2943_v52 }
 0x32c   : > { %1860 = vst [vmem:[%s2952_s9 + $0x340] sm:$0xff] %v1686_v57 }
 0x32d   : > { %1861 = vst [vmem:[%s2952_s9 + $0x348] sm:$0xff] %v1688_v59  ;;  %v1691_v46 = vpop.f32.mrb[106].mxu1 }
 0x32e   : > { %v1692_v60 = vadd.f32 %v1691_v46, %v2938_v48  ;;  %v1693_v41 = vpop.f32.mrb[107].mxu1 }
 0x32f   : > { %v1694_v44 = vadd.f32 %v1693_v41, %v2943_v52 }
 0x330   : > { %1862 = vst [vmem:[%s2952_s9 + $0x350] sm:$0xff] %v1692_v60 }
 0x331   : > { %1863 = vst [vmem:[%s2952_s9 + $0x358] sm:$0xff] %v1694_v44  ;;  %v1697_v61 = vpop.f32.mrb[108].mxu1 }
 0x332   : > { %v1698_v62 = vadd.f32 %v1697_v61, %v2938_v48  ;;  %v1699_v63 = vpop.f32.mrb[109].mxu1 }
 0x333   : > { %v1700_v0 = vadd.f32 %v1699_v63, %v2943_v52 }
 0x334   : > { %1864 = vst [vmem:[%s2952_s9 + $0x360] sm:$0xff] %v1698_v62 }
 0x335   : > { %1865 = vst [vmem:[%s2952_s9 + $0x368] sm:$0xff] %v1700_v0  ;;  %v1703_v1 = vpop.f32.mrb[110].mxu1 }
 0x336   : > { %v1704_v2 = vadd.f32 %v1703_v1, %v2938_v48  ;;  %v1705_v3 = vpop.f32.mrb[111].mxu1 }
 0x337   : > { %v1706_v4 = vadd.f32 %v1705_v3, %v2943_v52 }
 0x338   : > { %1866 = vst [vmem:[%s2952_s9 + $0x370] sm:$0xff] %v1704_v2 }
 0x339   : > { %1867 = vst [vmem:[%s2952_s9 + $0x378] sm:$0xff] %v1706_v4  ;;  %v1709_v5 = vpop.f32.mrb[112].mxu1 }
 0x33a   : > { %v1710_v6 = vadd.f32 %v1709_v5, %v2938_v48  ;;  %v1711_v7 = vpop.f32.mrb[113].mxu1 }
 0x33b   : > { %v1712_v8 = vadd.f32 %v1711_v7, %v2943_v52 }
 0x33c   : > { %1868 = vst [vmem:[%s2952_s9 + $0x380] sm:$0xff] %v1710_v6 }
 0x33d   : > { %1869 = vst [vmem:[%s2952_s9 + $0x388] sm:$0xff] %v1712_v8  ;;  %v1715_v9 = vpop.f32.mrb[114].mxu1 }
 0x33e   : > { %v1716_v10 = vadd.f32 %v1715_v9, %v2938_v48  ;;  %v1717_v49 = vpop.f32.mrb[115].mxu1 }
 0x33f   : > { %v1718_v11 = vadd.f32 %v1717_v49, %v2943_v52 }
 0x340   : > { %1870 = vst [vmem:[%s2952_s9 + $0x390] sm:$0xff] %v1716_v10 }
 0x341   : > { %1871 = vst [vmem:[%s2952_s9 + $0x398] sm:$0xff] %v1718_v11  ;;  %v1721_v50 = vpop.f32.mrb[116].mxu1 }
 0x342   : > { %v1722_v12 = vadd.f32 %v1721_v50, %v2938_v48  ;;  %v1723_v13 = vpop.f32.mrb[117].mxu1 }
 0x343   : > { %v1724_v14 = vadd.f32 %v1723_v13, %v2943_v52 }
 0x344   : > { %1872 = vst [vmem:[%s2952_s9 + $0x3a0] sm:$0xff] %v1722_v12 }
 0x345   : > { %1873 = vst [vmem:[%s2952_s9 + $0x3a8] sm:$0xff] %v1724_v14  ;;  %v1727_v15 = vpop.f32.mrb[118].mxu1 }
 0x346   : > { %v1728_v16 = vadd.f32 %v1727_v15, %v2938_v48  ;;  %v1729_v17 = vpop.f32.mrb[119].mxu1 }
 0x347   : > { %v1730_v18 = vadd.f32 %v1729_v17, %v2943_v52 }
 0x348   : > { %1874 = vst [vmem:[%s2952_s9 + $0x3b0] sm:$0xff] %v1728_v16 }
 0x349   : > { %1875 = vst [vmem:[%s2952_s9 + $0x3b8] sm:$0xff] %v1730_v18  ;;  %v1733_v19 = vpop.f32.mrb[120].mxu1 }
 0x34a   : > { %v1734_v20 = vadd.f32 %v1733_v19, %v2938_v48  ;;  %v1735_v21 = vpop.f32.mrb[121].mxu1 }
 0x34b   : > { %v1736_v22 = vadd.f32 %v1735_v21, %v2943_v52 }
 0x34c   : > { %1876 = vst [vmem:[%s2952_s9 + $0x3c0] sm:$0xff] %v1734_v20 }
 0x34d   : > { %1877 = vst [vmem:[%s2952_s9 + $0x3c8] sm:$0xff] %v1736_v22  ;;  %v1739_v23 = vpop.f32.mrb[122].mxu1 }
 0x34e   : > { %v1740_v24 = vadd.f32 %v1739_v23, %v2938_v48  ;;  %v1741_v25 = vpop.f32.mrb[123].mxu1 }
 0x34f   : > { %v1742_v26 = vadd.f32 %v1741_v25, %v2943_v52 }
 0x350   : > { %1878 = vst [vmem:[%s2952_s9 + $0x3d0] sm:$0xff] %v1740_v24 }
 0x351   : > { %1879 = vst [vmem:[%s2952_s9 + $0x3d8] sm:$0xff] %v1742_v26  ;;  %v1745_v27 = vpop.f32.mrb[124].mxu1 }
 0x352   : > { %v1746_v28 = vadd.f32 %v1745_v27, %v2938_v48  ;;  %v1747_v29 = vpop.f32.mrb[125].mxu1 }
 0x353   : > { %v1748_v30 = vadd.f32 %v1747_v29, %v2943_v52 }
 0x354   : > { %1880 = vst [vmem:[%s2952_s9 + $0x3e0] sm:$0xff] %v1746_v28 }
 0x355   : > { %1881 = vst [vmem:[%s2952_s9 + $0x3e8] sm:$0xff] %v1748_v30  ;;  %v1751_v31 = vpop.f32.mrb[126].mxu1 }
 0x356   : > { %v1752_v32 = vadd.f32 %v1751_v31, %v2938_v48  ;;  %v1753_v33 = vpop.f32.mrb[127].mxu1 }
 0x357   : > { %v1754_v34 = vadd.f32 %v1753_v33, %v2943_v52 }
 0x358   : > { %1882 = vst [vmem:[%s2952_s9 + $0x3f0] sm:$0xff] %v1752_v32 }
 0x359   : > { %1883 = vst [vmem:[%s2952_s9 + $0x3f8] sm:$0xff] %v1754_v34 }
 0x35a   : > { %2358 = shalt.err (!%p2355_p11)
}
 0x35b   : > { %s2359_s26 = scalar_lea.hbm %s3228_s7, 16384  ;;  %s2363_s6 = scalar_lea.hbm %s3287_s5, 32768 }
 0x35c   : > { %p2360_p0 = scmp.ne.s32.totalorder %s3228_s7, %s2359_s26  ;;  %p2364_p6 = scmp.lt.u32.totalorder %s3228_s7, %s3287_s5 }
 0x35d   : > { %p2365_p7 = scmp.lt.u32.totalorder %s2363_s6, %s2359_s26  ;;  %p2367_p8 = scmp.lt.u32.totalorder %s2359_s26, %s3228_s7 }
 0x35e   : > { %p2361_p4 = pnand %p2360_p0, %p3304_p12 }
 0x35f   : > { %p2366_p2 = por %p2365_p7, %p2364_p6 }
 0x360   : > { %p2362_p13 = pneg %p2361_p4 }
 0x361   : > { %p2368_p1 = por %p2367_p8, %p2366_p2 }
 0x363   : > { %p2369_p10 = pnand %p2368_p1, %p2362_p13 }
 0x365   : > { %2372 = shalt.err (!%p2369_p10)
}
 0x366   : > { %s2439_s10 = smov 256   ;;  %s2440_s16 = smov 16  }
 0x367   : > { %2182 = dma.vmem_to_hbm [thread:$0]  (%p3304_p12), %s3230_s12, 16384, %s3228_s7, %s1885_s21, %s2439_s10, %s2439_s10, %s2440_s16  }
 0x368 PF: > { %s1916_s14 = sand.u32 1, %s2411_s18   ;;  %p3305_p3 = scmp.ne.s32.totalorder %s3296_s29, 0 }
 0x369   : > { %p3306_p5 = scmp.ge.s32.totalorder %s2431_s23, 2  ;;  %s1917_s27 = scalar_lea.sflag [#allocation5], %s1916_s14 }
 0x36b   : > { %p2196_p9 = pnand %p3306_p5, %p3305_p3 }
 0x36d   : > { %2406 = dma.done.wait (!%p2196_p9), %s1917_s27, 16384  }
 0x36e   : > { %2408 = vsyncadd (!%p2196_p9), %s1917_s27, 4294950912  ;;  %s22_s23 = sadd.s32 1, %s2431_s23   ;;  %s3307_s18 = smov %s2415_s19 }
 0x36f   : > { %p19_p11 = scmp.ge.s32.totalorder %s22_s23, 4   ;;  %s3308_s19 = smov %s2419_s20 }
 0x370   : > { %s3309_s20 = smov %s2619_s17  ;;  %s3310_s21 = smov %s2427_s22 }
 0x371   : > { %s3311_s22 = smov %s3313_s8  ;;  %21 = sbr.rel (!%p19_p11) target bundleno = 7 (0x7), region = 101 }
 0x378   :  { %1922 = vsyncpa [#allocation4], 1 }
 0x379   :  { %1924 = vsyncpa [#allocation4 + $0x1], 1 }
 0x37a   :  { %1925 = vsyncpa [#allocation7], 1 }
 0x37b   :  { %1926 = vsyncpa [#allocation5], 1 }
 0x37c   :  { %1928 = vsyncpa [#allocation5 + $0x1], 1 }

</bundles_post_ra>
